<compile_context>
chip_gen: v5e
topology: v5e:2x2
jax: 0.10.0
libtpu: 0.0.40
codegen_flags: <defaults>
</compile_context>

<pallas_src>
import functools
import math

import jax
import jax.numpy as jnp
from jax import lax
from jax.experimental import pallas as pl
from jax.experimental.pallas import tpu as pltpu

# Per-step VMEM budget: leaves headroom even on v7x (64 MiB physical VMEM).
VMEM_LIMIT = 32 * 1024 * 1024
LN_EPS = 1e-5


def _choose_tile_m(M, cap=512):
    """Largest multiple-of-8 divisor of M, capped (full block if M not /8)."""
    if M <= 8 or M % 8 != 0:
        return M
    t = min(cap, M)
    t -= t % 8
    while t >= 8:
        if M % t == 0:
            return t
        t -= 8
    return M


def _mosaic_params():
    return pltpu.CompilerParams(dimension_semantics=("parallel",),
                                vmem_limit_bytes=VMEM_LIMIT)


# ----------------------------- Pallas kernels -----------------------------

def _matmul_bias_kernel(x_ref, w_ref, b_ref, o_ref, *, activation):
    x = x_ref[...].astype(jnp.bfloat16)
    y = jnp.dot(x, w_ref[...], preferred_element_type=jnp.float32) + b_ref[...]
    if activation == "relu":
        y = jnp.maximum(y, 0.0)
    o_ref[...] = y.astype(o_ref.dtype)


def matmul_bias(x, w, b, activation=None, out_dtype=jnp.float32):
    """y = act(x @ w + b); x:(M,K), w:(K,N) (bf16), b:(N,). Row-tiled over M."""
    M, K = x.shape
    N = w.shape[1]
    tm = _choose_tile_m(M)
    flops = 2 * M * K * N
    bytes_acc = int(M * K * x.dtype.itemsize + K * N * 2 + N * 4
                    + M * N * jnp.dtype(out_dtype).itemsize)
    return pl.pallas_call(
        functools.partial(_matmul_bias_kernel, activation=activation),
        out_shape=jax.ShapeDtypeStruct((M, N), out_dtype),
        grid=(M // tm,),
        in_specs=[pl.BlockSpec((tm, K), lambda i: (i, 0)),
                  pl.BlockSpec((K, N), lambda i: (0, 0)),
                  pl.BlockSpec((1, N), lambda i: (0, 0))],
        out_specs=pl.BlockSpec((tm, N), lambda i: (i, 0)),
        compiler_params=_mosaic_params(),
        cost_estimate=pl.CostEstimate(flops=flops, transcendentals=0,
                                      bytes_accessed=bytes_acc),
    )(x, w.astype(jnp.bfloat16), b.reshape(1, N).astype(jnp.float32))


def _matmul_bias_add_ln_kernel(x_ref, r_ref, w_ref, b_ref, g_ref, be_ref,
                               o_ref, *, eps):
    x = x_ref[...].astype(jnp.bfloat16)
    y = jnp.dot(x, w_ref[...], preferred_element_type=jnp.float32) + b_ref[...]
    z = r_ref[...] + y                                  # residual in f32
    mean = jnp.mean(z, axis=-1, keepdims=True)
    var = jnp.mean((z - mean) ** 2, axis=-1, keepdims=True)
    zn = (z - mean) * lax.rsqrt(var + eps)
    o_ref[...] = (zn * g_ref[...] + be_ref[...]).astype(o_ref.dtype)


def matmul_bias_residual_ln(x, resid, w, b, gamma, beta, eps=LN_EPS):
    """LayerNorm(resid + x @ w + b); x:(M,K) (bf16 ok), resid:(M,N) f32."""
    M, K = x.shape
    N = w.shape[1]
    tm = _choose_tile_m(M)
    flops = 2 * M * K * N + 10 * M * N
    bytes_acc = int(M * K * x.dtype.itemsize + M * N * 4 + K * N * 2
                    + 3 * N * 4 + M * N * 4)
    return pl.pallas_call(
        functools.partial(_matmul_bias_add_ln_kernel, eps=eps),
        out_shape=jax.ShapeDtypeStruct((M, N), jnp.float32),
        grid=(M // tm,),
        in_specs=[pl.BlockSpec((tm, K), lambda i: (i, 0)),
                  pl.BlockSpec((tm, N), lambda i: (i, 0)),
                  pl.BlockSpec((K, N), lambda i: (0, 0)),
                  pl.BlockSpec((1, N), lambda i: (0, 0)),
                  pl.BlockSpec((1, N), lambda i: (0, 0)),
                  pl.BlockSpec((1, N), lambda i: (0, 0))],
        out_specs=pl.BlockSpec((tm, N), lambda i: (i, 0)),
        compiler_params=_mosaic_params(),
        cost_estimate=pl.CostEstimate(flops=flops, transcendentals=0,
                                      bytes_accessed=bytes_acc),
    )(x, resid, w.astype(jnp.bfloat16), b.reshape(1, N).astype(jnp.float32),
      gamma.reshape(1, N), beta.reshape(1, N))


def _ffn_ln_kernel(x_ref, w1_ref, b1_ref, w2_ref, b2_ref, g_ref, be_ref,
                   o_ref, *, eps):
    x = x_ref[...]                                      # (tm, D) f32 residual
    h = jnp.dot(x.astype(jnp.bfloat16), w1_ref[...],
                preferred_element_type=jnp.float32) + b1_ref[...]
    h = jnp.maximum(h, 0.0)                             # relu
    y = jnp.dot(h.astype(jnp.bfloat16), w2_ref[...],
                preferred_element_type=jnp.float32) + b2_ref[...]
    z = x + y
    mean = jnp.mean(z, axis=-1, keepdims=True)
    var = jnp.mean((z - mean) ** 2, axis=-1, keepdims=True)
    zn = (z - mean) * lax.rsqrt(var + eps)
    o_ref[...] = (zn * g_ref[...] + be_ref[...]).astype(o_ref.dtype)


def ffn_block(x, w1, b1, w2, b2, gamma, beta, eps=LN_EPS):
    """LayerNorm(x + conv2(relu(conv1(x)))) with kernel_size=1 convs; x:(M,D)."""
    M, D = x.shape
    F = w1.shape[1]
    tm = _choose_tile_m(M)
    flops = 2 * M * D * F * 2 + 12 * M * D
    bytes_acc = int(M * D * 4 + 2 * D * F * 2 + (F + 3 * D) * 4 + M * D * 4)
    return pl.pallas_call(
        functools.partial(_ffn_ln_kernel, eps=eps),
        out_shape=jax.ShapeDtypeStruct((M, D), jnp.float32),
        grid=(M // tm,),
        in_specs=[pl.BlockSpec((tm, D), lambda i: (i, 0)),
                  pl.BlockSpec((D, F), lambda i: (0, 0)),
                  pl.BlockSpec((1, F), lambda i: (0, 0)),
                  pl.BlockSpec((F, D), lambda i: (0, 0)),
                  pl.BlockSpec((1, D), lambda i: (0, 0)),
                  pl.BlockSpec((1, D), lambda i: (0, 0)),
                  pl.BlockSpec((1, D), lambda i: (0, 0))],
        out_specs=pl.BlockSpec((tm, D), lambda i: (i, 0)),
        compiler_params=_mosaic_params(),
        cost_estimate=pl.CostEstimate(flops=flops, transcendentals=0,
                                      bytes_accessed=bytes_acc),
    )(x, w1.astype(jnp.bfloat16), b1.reshape(1, F).astype(jnp.float32),
      w2.astype(jnp.bfloat16), b2.reshape(1, D).astype(jnp.float32),
      gamma.reshape(1, D), beta.reshape(1, D))


def _attention_kernel(q_ref, k_ref, v_ref, o_ref, *, scale, causal):
    # Refs are (H, L, E) / (H, S, E) bf16 (B dim squeezed by BlockSpec).
    q = q_ref[...].astype(jnp.bfloat16)
    k = k_ref[...].astype(jnp.bfloat16)
    v = v_ref[...].astype(jnp.bfloat16)
    # All heads in one batched contraction; contracts last dims (no k.T).
    s = jnp.einsum("hle,hse->hls", q, k,
                   preferred_element_type=jnp.float32) * scale
    if causal:
        row = lax.broadcasted_iota(jnp.int32, s.shape, 1)
        col = lax.broadcasted_iota(jnp.int32, s.shape, 2)
        s = jnp.where(col > row, -1e30, s)              # TriangularCausalMask
    m = jnp.max(s, axis=-1, keepdims=True)              # softmax stats in f32
    p = jnp.exp(s - m)
    p = p * pl.reciprocal(jnp.sum(p, axis=-1, keepdims=True), approx=True)
    ctx = jnp.einsum("hls,hse->hle", p.astype(jnp.bfloat16), v,
                     preferred_element_type=jnp.float32)
    o_ref[...] = ctx.astype(o_ref.dtype)


def multihead_attention(q, k, v, causal):
    """q:(B,H,L,E) bf16, k/v:(B,H,S,E) bf16 -> (B,H,L,E) bf16."""
    B, H, L, E = q.shape
    S = k.shape[2]
    scale = 1.0 / math.sqrt(E)
    flops = 4 * B * H * L * S * E
    bytes_acc = int((q.size + k.size + v.size + B * H * L * E) * 2)
    return pl.pallas_call(
        functools.partial(_attention_kernel, scale=scale, causal=causal),
        out_shape=jax.ShapeDtypeStruct((B, H, L, E), jnp.bfloat16),
        grid=(B,),
        in_specs=[
            pl.BlockSpec((pl.Squeezed(), H, L, E), lambda b: (b, 0, 0, 0)),
            pl.BlockSpec((pl.Squeezed(), H, S, E), lambda b: (b, 0, 0, 0)),
            pl.BlockSpec((pl.Squeezed(), H, S, E), lambda b: (b, 0, 0, 0))],
        out_specs=pl.BlockSpec((pl.Squeezed(), H, L, E), lambda b: (b, 0, 0, 0)),
        compiler_params=_mosaic_params(),
        cost_estimate=pl.CostEstimate(flops=flops, transcendentals=B * H * L * S,
                                      bytes_accessed=bytes_acc),
    )(q, k, v)


def _ln_proj_kernel(x_ref, g_ref, be_ref, w_ref, b_ref, o_ref, *, eps):
    z = x_ref[...]
    mean = jnp.mean(z, axis=-1, keepdims=True)
    var = jnp.mean((z - mean) ** 2, axis=-1, keepdims=True)
    zn = (z - mean) * lax.rsqrt(var + eps)
    zn = zn * g_ref[...] + be_ref[...]
    o_ref[...] = (jnp.dot(zn.astype(jnp.bfloat16), w_ref[...],
                          preferred_element_type=jnp.float32)
                  + b_ref[...]).astype(o_ref.dtype)


def layernorm_projection(x, gamma, beta, w, b, eps=LN_EPS):
    """Linear(LayerNorm(x)); output padded to a lane-dense 128-wide slab."""
    M, D = x.shape
    N = w.shape[1]
    pad = (-N) % 128
    if pad:
        w = jnp.pad(w, ((0, 0), (0, pad)))
        b = jnp.pad(b, ((0, pad),))
    Np = N + pad
    tm = _choose_tile_m(M)
    flops = 2 * M * D * Np + 10 * M * D
    bytes_acc = int(M * D * 4 + D * Np * 2 + (2 * D + Np) * 4 + M * Np * 4)
    out = pl.pallas_call(
        functools.partial(_ln_proj_kernel, eps=eps),
        out_shape=jax.ShapeDtypeStruct((M, Np), jnp.float32),
        grid=(M // tm,),
        in_specs=[pl.BlockSpec((tm, D), lambda i: (i, 0)),
                  pl.BlockSpec((1, D), lambda i: (0, 0)),
                  pl.BlockSpec((1, D), lambda i: (0, 0)),
                  pl.BlockSpec((D, Np), lambda i: (0, 0)),
                  pl.BlockSpec((1, Np), lambda i: (0, 0))],
        out_specs=pl.BlockSpec((tm, Np), lambda i: (i, 0)),
        compiler_params=_mosaic_params(),
        cost_estimate=pl.CostEstimate(flops=flops, transcendentals=0,
                                      bytes_accessed=bytes_acc),
    )(x, gamma.reshape(1, D), beta.reshape(1, D),
      w.astype(jnp.bfloat16), b.reshape(1, Np).astype(jnp.float32))
    return out[:, :N]


# --------------------------- model (glue in JAX) ---------------------------

def decoder_layer(x, k_cross, v_cross, p, n_heads):
    """x = norm1(x + SelfAttn(x)); x = norm2(x + CrossAttn(x, cross));
       x = norm3(x + conv2(relu(conv1(x)))).  Dropout is identity (eval).
       k_cross / v_cross : (B, H, S, E) precomputed cross K/V for this layer."""
    B, L, D = x.shape
    E = D // n_heads
    M = B * L
    x2d = x.reshape(M, D)

    # --- self attention (causal) + residual + norm1 ---
    sa = p["self_attn"]
    qkv = matmul_bias(x2d, sa["w_qkv"], sa["b_qkv"], out_dtype=jnp.bfloat16)
    qkv = jnp.transpose(qkv.reshape(B, L, 3, n_heads, E), (2, 0, 3, 1, 4))
    o = multihead_attention(qkv[0], qkv[1], qkv[2], causal=True)   # (B,H,L,E)
    ctx = jnp.transpose(o, (0, 2, 1, 3)).reshape(M, D)
    x2d = matmul_bias_residual_ln(ctx, x2d, sa["wo"], sa["bo"],
                                  p["norm1_g"], p["norm1_b"])

    # --- cross attention (unmasked) + residual + norm2 ---
    ca = p["cross_attn"]
    q = matmul_bias(x2d, ca["wq"], ca["bq"], out_dtype=jnp.bfloat16)
    q = jnp.transpose(q.reshape(B, L, n_heads, E), (0, 2, 1, 3))
    o = multihead_attention(q, k_cross, v_cross, causal=False)
    ctx = jnp.transpose(o, (0, 2, 1, 3)).reshape(M, D)
    x2d = matmul_bias_residual_ln(ctx, x2d, ca["wo"], ca["bo"],
                                  p["norm2_g"], p["norm2_b"])

    # --- pointwise-conv FFN + residual + norm3 (single fused kernel) ---
    x2d = ffn_block(x2d, p["w1"], p["b1"], p["w2"], p["b2"],
                    p["norm3_g"], p["norm3_b"])
    return x2d.reshape(B, L, D)


def decoder_forward(x, cross, params, n_heads):
    """Decoder.forward: layers -> norm -> projection."""
    B, L, D = x.shape
    S = cross.shape[1]
    E = D // n_heads
    layers = params["layers"]
    n_layers = len(layers)

    # Cross K/V for *all* layers in one fused matmul (cross is layer-invariant).
    w_kv_all = jnp.concatenate([p["cross_attn"]["w_kv"] for p in layers], axis=1)
    b_kv_all = jnp.concatenate([p["cross_attn"]["b_kv"] for p in layers], axis=0)
    kv_all = matmul_bias(cross.reshape(B * S, D), w_kv_all, b_kv_all,
                         out_dtype=jnp.bfloat16)
    # (B*S, n_layers*2*D) -> (n_layers, 2, B, H, S, E)
    kv_all = jnp.transpose(
        kv_all.reshape(B, S, n_layers, 2, n_heads, E), (2, 3, 0, 4, 1, 5))

    for li, p in enumerate(layers):
        x = decoder_layer(x, kv_all[li, 0], kv_all[li, 1], p, n_heads)

    out = layernorm_projection(x.reshape(B * L, D),
                               params["norm_g"], params["norm_b"],
                               params["proj_w"], params["proj_b"])
    return out.reshape(B, L, -1)


# ------------------------------ param init --------------------------------

def init_params(key, num_layers, d_model, d_ff, c_out):
    def dense(k, fan_in, fan_out):
        kw, kb = jax.random.split(k)
        lim = 1.0 / math.sqrt(fan_in)
        w = jax.random.uniform(kw, (fan_in, fan_out), jnp.float32, -lim, lim)
        b = jax.random.uniform(kb, (fan_out,), jnp.float32, -lim, lim)
        return w, b

    def self_attn_params(k):
        ks = jax.random.split(k, 4)
        wq, bq = dense(ks[0], d_model, d_model)
        wk, bk = dense(ks[1], d_model, d_model)
        wv, bv = dense(ks[2], d_model, d_model)
        wo, bo = dense(ks[3], d_model, d_model)
        return dict(
            w_qkv=jnp.concatenate([wq, wk, wv], axis=1).astype(jnp.bfloat16),
            b_qkv=jnp.concatenate([bq, bk, bv]),
            wo=wo.astype(jnp.bfloat16), bo=bo)

    def cross_attn_params(k):
        ks = jax.random.split(k, 4)
        wq, bq = dense(ks[0], d_model, d_model)
        wk, bk = dense(ks[1], d_model, d_model)
        wv, bv = dense(ks[2], d_model, d_model)
        wo, bo = dense(ks[3], d_model, d_model)
        return dict(
            wq=wq.astype(jnp.bfloat16), bq=bq,
            w_kv=jnp.concatenate([wk, wv], axis=1).astype(jnp.bfloat16),
            b_kv=jnp.concatenate([bk, bv]),
            wo=wo.astype(jnp.bfloat16), bo=bo)

    keys = jax.random.split(key, num_layers + 1)
    ones = jnp.ones((d_model,), jnp.float32)
    zeros = jnp.zeros((d_model,), jnp.float32)
    layers = []
    for lk in keys[:num_layers]:
        ks = jax.random.split(lk, 4)
        w1, b1 = dense(ks[2], d_model, d_ff)   # Conv1d(d_model, d_ff, 1)
        w2, b2 = dense(ks[3], d_ff, d_model)   # Conv1d(d_ff, d_model, 1)
        layers.append(dict(
            self_attn=self_attn_params(ks[0]),
            cross_attn=cross_attn_params(ks[1]),
            w1=w1.astype(jnp.bfloat16), b1=b1,
            w2=w2.astype(jnp.bfloat16), b2=b2,
            norm1_g=ones, norm1_b=zeros,
            norm2_g=ones, norm2_b=zeros,
            norm3_g=ones, norm3_b=zeros,
        ))
    proj_w, proj_b = dense(keys[-1], d_model, c_out)
    return dict(layers=layers, norm_g=ones, norm_b=zeros,
                proj_w=proj_w.astype(jnp.bfloat16), proj_b=proj_b)


# --------------------------------- main ------------------------------------

if __name__ == "__main__":
    B, L, S, D, H, DFF, C_OUT = 2, 8, 16, 32, 4, 64, 8
    NUM_LAYERS = 2

    root = jax.random.PRNGKey(0)
    kp, kx, kc = jax.random.split(root, 3)
    params = init_params(kp, NUM_LAYERS, D, DFF, C_OUT)

    x = jax.random.normal(kx, (B, L, D), jnp.float32)       # decoder input
    cross = jax.random.normal(kc, (B, S, D), jnp.float32)   # encoder memory

    fwd = jax.jit(decoder_forward, static_argnums=3)
    out = fwd(x, cross, params, H)
    out = jax.block_until_ready(out)
    assert out.shape == (B, L, C_OUT), out.shape
    assert bool(jnp.all(jnp.isfinite(out)))
    print("KERNEL_OK")
</pallas_src>

<mosaic_0001>
module attributes {stable_mosaic.version = 11 : i64} {
  func.func @_matmul_bias_kernel(%arg0: i32, %arg1: memref<16x32xf32, #tpu.memory_space<vmem>>, %arg2: memref<32x96xbf16, #tpu.memory_space<vmem>>, %arg3: memref<1x96xf32, #tpu.memory_space<vmem>>, %arg4: memref<16x96xbf16, #tpu.memory_space<vmem>>) attributes {dimension_semantics = [#tpu.dimension_semantics<parallel>], iteration_bounds = array<i64: 1>, scalar_prefetch = 0 : i64, scratch_operands = 0 : i64, tpu.core_type = #tpu.core_type<tc>, window_params = [{transform_indices = @transform_0, window_bounds = array<i64: 16, 32>}, {pipeline_mode = #tpu.pipeline_mode<synchronous>, transform_indices = @transform_1, window_bounds = array<i64: 32, 96>}, {pipeline_mode = #tpu.pipeline_mode<synchronous>, transform_indices = @transform_2, window_bounds = array<i64: 1, 96>}, {transform_indices = @transform_3, window_bounds = array<i64: 16, 96>}]} {
    %c0 = arith.constant 0 : index
    %c0_0 = arith.constant 0 : index
    %0 = vector.load %arg1[%c0, %c0_0] : memref<16x32xf32, #tpu.memory_space<vmem>>, vector<16x32xf32>
    %1 = arith.truncf %0 : vector<16x32xf32> to vector<16x32xbf16>
    %c0_1 = arith.constant 0 : index
    %c0_2 = arith.constant 0 : index
    %2 = vector.load %arg2[%c0_1, %c0_2] : memref<32x96xbf16, #tpu.memory_space<vmem>>, vector<32x96xbf16>
    %cst = arith.constant dense<0.000000e+00> : vector<16x96xf32>
    %3 = tpu.matmul %1, %2, %cst {dimension_numbers = #tpu.dot_dimension_numbers<[1], [0], [0], [1], [0, 0, 1, 1], [], []>} : vector<16x32xbf16>, vector<32x96xbf16>, vector<16x96xf32> -> vector<16x96xf32>
    %c0_3 = arith.constant 0 : index
    %c0_4 = arith.constant 0 : index
    %4 = vector.load %arg3[%c0_3, %c0_4] : memref<1x96xf32, #tpu.memory_space<vmem>>, vector<1x96xf32>
    %5 = vector.broadcast %4 : vector<1x96xf32> to vector<16x96xf32>
    %6 = arith.addf %3, %5 : vector<16x96xf32>
    %7 = arith.truncf %6 : vector<16x96xf32> to vector<16x96xbf16>
    %c0_5 = arith.constant 0 : index
    %c0_6 = arith.constant 0 : index
    %8 = vector.load %arg4[%c0_5, %c0_6] : memref<16x96xbf16, #tpu.memory_space<vmem>>, vector<16x96xbf16>
    tpu.vector_store %arg4[%c0_5, %c0_6], %7 {strides = array<i32>} : memref<16x96xbf16, #tpu.memory_space<vmem>>, vector<16x96xbf16>,
    return
  }
  func.func @transform_0(%arg0: i32) -> (i32, i32) {
    %c0_i32 = arith.constant 0 : i32
    %c0_i32_0 = arith.constant 0 : i32
    return %arg0, %c0_i32 : i32, i32
  }
  func.func @transform_1(%arg0: i32) -> (i32, i32) {
    %c0_i32 = arith.constant 0 : i32
    %c0_i32_0 = arith.constant 0 : i32
    %c0_i32_1 = arith.constant 0 : i32
    return %c0_i32, %c0_i32_0 : i32, i32
  }
  func.func @transform_2(%arg0: i32) -> (i32, i32) {
    %c0_i32 = arith.constant 0 : i32
    %c0_i32_0 = arith.constant 0 : i32
    %c0_i32_1 = arith.constant 0 : i32
    return %c0_i32, %c0_i32_0 : i32, i32
  }
  func.func @transform_3(%arg0: i32) -> (i32, i32) {
    %c0_i32 = arith.constant 0 : i32
    %c0_i32_0 = arith.constant 0 : i32
    return %arg0, %c0_i32 : i32, i32
  }
}

module attributes {stable_mosaic.version = 11 : i64} {
  func.func @_attention_kernel(%arg0: i32, %arg1: memref<1x4x8x8xbf16, #tpu.memory_space<vmem>>, %arg2: memref<1x4x8x8xbf16, #tpu.memory_space<vmem>>, %arg3: memref<1x4x8x8xbf16, #tpu.memory_space<vmem>>, %arg4: memref<1x4x8x8xbf16, #tpu.memory_space<vmem>>) attributes {dimension_semantics = [#tpu.dimension_semantics<parallel>], iteration_bounds = array<i64: 2>, scalar_prefetch = 0 : i64, scratch_operands = 0 : i64, tpu.core_type = #tpu.core_type<tc>, window_params = [{transform_indices = @transform_0, window_bounds = array<i64: 1, 4, 8, 8>}, {transform_indices = @transform_1, window_bounds = array<i64: 1, 4, 8, 8>}, {transform_indices = @transform_2, window_bounds = array<i64: 1, 4, 8, 8>}, {transform_indices = @transform_3, window_bounds = array<i64: 1, 4, 8, 8>}]} {
    %c0 = arith.constant 0 : index
    %c0_0 = arith.constant 0 : index
    %c0_1 = arith.constant 0 : index
    %c0_2 = arith.constant 0 : index
    %0 = vector.load %arg1[%c0, %c0_0, %c0_1, %c0_2] : memref<1x4x8x8xbf16, #tpu.memory_space<vmem>>, vector<1x4x8x8xbf16>
    %1 = vector.shape_cast %0 : vector<1x4x8x8xbf16> to vector<4x8x8xbf16>
    %c0_3 = arith.constant 0 : index
    %c0_4 = arith.constant 0 : index
    %c0_5 = arith.constant 0 : index
    %c0_6 = arith.constant 0 : index
    %2 = vector.load %arg2[%c0_3, %c0_4, %c0_5, %c0_6] : memref<1x4x8x8xbf16, #tpu.memory_space<vmem>>, vector<1x4x8x8xbf16>
    %3 = vector.shape_cast %2 : vector<1x4x8x8xbf16> to vector<4x8x8xbf16>
    %c0_7 = arith.constant 0 : index
    %c0_8 = arith.constant 0 : index
    %c0_9 = arith.constant 0 : index
    %c0_10 = arith.constant 0 : index
    %4 = vector.load %arg3[%c0_7, %c0_8, %c0_9, %c0_10] : memref<1x4x8x8xbf16, #tpu.memory_space<vmem>>, vector<1x4x8x8xbf16>
    %5 = vector.shape_cast %4 : vector<1x4x8x8xbf16> to vector<4x8x8xbf16>
    "tpu.trace_start"() <{level = 10 : i32, message = "hle,hse->hls"}> : () -> ()
    %cst = arith.constant dense<0.000000e+00> : vector<4x8x8xf32>
    %6 = tpu.matmul %1, %3, %cst {dimension_numbers = #tpu.dot_dimension_numbers<[2], [2], [1], [1], [0, 0, 0, 1, 1, 1], [0], [0]>} : vector<4x8x8xbf16>, vector<4x8x8xbf16>, vector<4x8x8xf32> -> vector<4x8x8xf32>
    "tpu.trace_stop"() : () -> ()
    %cst_11 = arith.constant 0.353553385 : f32
    %7 = vector.broadcast %cst_11 : f32 to vector<4x8x8xf32>
    %8 = arith.mulf %6, %7 : vector<4x8x8xf32>
    %9 = tpu.iota {dimensions = array<i32: 1>} : vector<4x8x8xi32>
    %10 = tpu.iota {dimensions = array<i32: 2>} : vector<4x8x8xi32>
    %11 = arith.cmpi sgt, %10, %9 : vector<4x8x8xi32>
    %cst_12 = arith.constant -1.000000e+30 : f32
    %12 = vector.broadcast %cst_12 : f32 to vector<4x8x8xf32>
    %13 = arith.select %11, %12, %8 : vector<4x8x8xi1>, vector<4x8x8xf32>
    %cst_13 = arith.constant dense<0xFF800000> : vector<4x8xf32>
    %14 = vector.multi_reduction <maximumf>, %13, %cst_13 [2] : vector<4x8x8xf32> to vector<4x8xf32>
    %15 = vector.shape_cast %14 : vector<4x8xf32> to vector<4x8x1xf32>
    %16 = vector.broadcast %15 : vector<4x8x1xf32> to vector<4x8x8xf32>
    %17 = arith.subf %13, %16 : vector<4x8x8xf32>
    %18 = math.exp %17 : vector<4x8x8xf32>
    %cst_14 = arith.constant dense<0.000000e+00> : vector<4x8xf32>
    %19 = vector.multi_reduction <add>, %18, %cst_14 [2] : vector<4x8x8xf32> to vector<4x8xf32>
    %20 = vector.shape_cast %19 : vector<4x8xf32> to vector<4x8x1xf32>
    %21 = tpu.reciprocal %20 {approx = true} : vector<4x8x1xf32> -> vector<4x8x1xf32>
    %22 = vector.broadcast %21 : vector<4x8x1xf32> to vector<4x8x8xf32>
    %23 = arith.mulf %18, %22 : vector<4x8x8xf32>
    %24 = arith.truncf %23 : vector<4x8x8xf32> to vector<4x8x8xbf16>
    "tpu.trace_start"() <{level = 10 : i32, message = "hls,hse->hle"}> : () -> ()
    %cst_15 = arith.constant dense<0.000000e+00> : vector<4x8x8xf32>
    %25 = tpu.matmul %24, %5, %cst_15 {dimension_numbers = #tpu.dot_dimension_numbers<[2], [1], [1], [2], [0, 0, 0, 1, 1, 2], [0], [0]>} : vector<4x8x8xbf16>, vector<4x8x8xbf16>, vector<4x8x8xf32> -> vector<4x8x8xf32>
    "tpu.trace_stop"() : () -> ()
    %26 = arith.truncf %25 : vector<4x8x8xf32> to vector<4x8x8xbf16>
    %c0_16 = arith.constant 0 : index
    %c0_17 = arith.constant 0 : index
    %c0_18 = arith.constant 0 : index
    %c0_19 = arith.constant 0 : index
    %27 = vector.load %arg4[%c0_16, %c0_17, %c0_18, %c0_19] : memref<1x4x8x8xbf16, #tpu.memory_space<vmem>>, vector<1x4x8x8xbf16>
    %28 = vector.shape_cast %27 : vector<1x4x8x8xbf16> to vector<4x8x8xbf16>
    %29 = vector.shape_cast %26 : vector<4x8x8xbf16> to vector<1x4x8x8xbf16>
    tpu.vector_store %arg4[%c0_16, %c0_17, %c0_18, %c0_19], %29 {strides = array<i32>} : memref<1x4x8x8xbf16, #tpu.memory_space<vmem>>, vector<1x4x8x8xbf16>,
    return
  }
  func.func @transform_0(%arg0: i32) -> (i32, i32, i32, i32) {
    %c0_i32 = arith.constant 0 : i32
    %c0_i32_0 = arith.constant 0 : i32
    %c0_i32_1 = arith.constant 0 : i32
    %c0_i32_2 = arith.constant 0 : i32
    return %arg0, %c0_i32, %c0_i32_0, %c0_i32_1 : i32, i32, i32, i32
  }
  func.func @transform_1(%arg0: i32) -> (i32, i32, i32, i32) {
    %c0_i32 = arith.constant 0 : i32
    %c0_i32_0 = arith.constant 0 : i32
    %c0_i32_1 = arith.constant 0 : i32
    %c0_i32_2 = arith.constant 0 : i32
    return %arg0, %c0_i32, %c0_i32_0, %c0_i32_1 : i32, i32, i32, i32
  }
  func.func @transform_2(%arg0: i32) -> (i32, i32, i32, i32) {
    %c0_i32 = arith.constant 0 : i32
    %c0_i32_0 = arith.constant 0 : i32
    %c0_i32_1 = arith.constant 0 : i32
    %c0_i32_2 = arith.constant 0 : i32
    return %arg0, %c0_i32, %c0_i32_0, %c0_i32_1 : i32, i32, i32, i32
  }
  func.func @transform_3(%arg0: i32) -> (i32, i32, i32, i32) {
    %c0_i32 = arith.constant 0 : i32
    %c0_i32_0 = arith.constant 0 : i32
    %c0_i32_1 = arith.constant 0 : i32
    %c0_i32_2 = arith.constant 0 : i32
    return %arg0, %c0_i32, %c0_i32_0, %c0_i32_1 : i32, i32, i32, i32
  }
}

module attributes {stable_mosaic.version = 11 : i64} {
  func.func @_matmul_bias_add_ln_kernel(%arg0: i32, %arg1: memref<16x32xbf16, #tpu.memory_space<vmem>>, %arg2: memref<16x32xf32, #tpu.memory_space<vmem>>, %arg3: memref<32x32xbf16, #tpu.memory_space<vmem>>, %arg4: memref<1x32xf32, #tpu.memory_space<vmem>>, %arg5: memref<1x32xf32, #tpu.memory_space<vmem>>, %arg6: memref<1x32xf32, #tpu.memory_space<vmem>>, %arg7: memref<16x32xf32, #tpu.memory_space<vmem>>) attributes {dimension_semantics = [#tpu.dimension_semantics<parallel>], iteration_bounds = array<i64: 1>, scalar_prefetch = 0 : i64, scratch_operands = 0 : i64, tpu.core_type = #tpu.core_type<tc>, window_params = [{transform_indices = @transform_0, window_bounds = array<i64: 16, 32>}, {transform_indices = @transform_1, window_bounds = array<i64: 16, 32>}, {pipeline_mode = #tpu.pipeline_mode<synchronous>, transform_indices = @transform_2, window_bounds = array<i64: 32, 32>}, {pipeline_mode = #tpu.pipeline_mode<synchronous>, transform_indices = @transform_3, window_bounds = array<i64: 1, 32>}, {pipeline_mode = #tpu.pipeline_mode<synchronous>, transform_indices = @transform_4, window_bounds = array<i64: 1, 32>}, {pipeline_mode = #tpu.pipeline_mode<synchronous>, transform_indices = @transform_5, window_bounds = array<i64: 1, 32>}, {transform_indices = @transform_6, window_bounds = array<i64: 16, 32>}]} {
    %c0 = arith.constant 0 : index
    %c0_0 = arith.constant 0 : index
    %0 = vector.load %arg1[%c0, %c0_0] : memref<16x32xbf16, #tpu.memory_space<vmem>>, vector<16x32xbf16>
    %c0_1 = arith.constant 0 : index
    %c0_2 = arith.constant 0 : index
    %1 = vector.load %arg3[%c0_1, %c0_2] : memref<32x32xbf16, #tpu.memory_space<vmem>>, vector<32x32xbf16>
    %cst = arith.constant dense<0.000000e+00> : vector<16x32xf32>
    %2 = tpu.matmul %0, %1, %cst {dimension_numbers = #tpu.dot_dimension_numbers<[1], [0], [0], [1], [0, 0, 1, 1], [], []>} : vector<16x32xbf16>, vector<32x32xbf16>, vector<16x32xf32> -> vector<16x32xf32>
    %c0_3 = arith.constant 0 : index
    %c0_4 = arith.constant 0 : index
    %3 = vector.load %arg4[%c0_3, %c0_4] : memref<1x32xf32, #tpu.memory_space<vmem>>, vector<1x32xf32>
    %4 = vector.broadcast %3 : vector<1x32xf32> to vector<16x32xf32>
    %5 = arith.addf %2, %4 : vector<16x32xf32>
    %c0_5 = arith.constant 0 : index
    %c0_6 = arith.constant 0 : index
    %6 = vector.load %arg2[%c0_5, %c0_6] : memref<16x32xf32, #tpu.memory_space<vmem>>, vector<16x32xf32>
    %7 = arith.addf %6, %5 : vector<16x32xf32>
    %cst_7 = arith.constant dense<0.000000e+00> : vector<16xf32>
    %8 = vector.multi_reduction <add>, %7, %cst_7 [1] : vector<16x32xf32> to vector<16xf32>
    %9 = vector.shape_cast %8 : vector<16xf32> to vector<16x1xf32>
    %cst_8 = arith.constant 3.200000e+01 : f32
    %10 = vector.broadcast %cst_8 : f32 to vector<16x1xf32>
    %11 = arith.divf %9, %10 : vector<16x1xf32>
    %12 = vector.broadcast %11 : vector<16x1xf32> to vector<16x32xf32>
    %13 = arith.subf %7, %12 : vector<16x32xf32>
    %14 = arith.mulf %13, %13 : vector<16x32xf32>
    %cst_9 = arith.constant dense<0.000000e+00> : vector<16xf32>
    %15 = vector.multi_reduction <add>, %14, %cst_9 [1] : vector<16x32xf32> to vector<16xf32>
    %16 = vector.shape_cast %15 : vector<16xf32> to vector<16x1xf32>
    %cst_10 = arith.constant 3.200000e+01 : f32
    %17 = vector.broadcast %cst_10 : f32 to vector<16x1xf32>
    %18 = arith.divf %16, %17 : vector<16x1xf32>
    %19 = vector.broadcast %11 : vector<16x1xf32> to vector<16x32xf32>
    %20 = arith.subf %7, %19 : vector<16x32xf32>
    %cst_11 = arith.constant 9.99999974E-6 : f32
    %21 = vector.broadcast %cst_11 : f32 to vector<16x1xf32>
    %22 = arith.addf %18, %21 : vector<16x1xf32>
    %23 = math.rsqrt %22 : vector<16x1xf32>
    %24 = vector.broadcast %23 : vector<16x1xf32> to vector<16x32xf32>
    %25 = arith.mulf %20, %24 : vector<16x32xf32>
    %c0_12 = arith.constant 0 : index
    %c0_13 = arith.constant 0 : index
    %26 = vector.load %arg5[%c0_12, %c0_13] : memref<1x32xf32, #tpu.memory_space<vmem>>, vector<1x32xf32>
    %27 = vector.broadcast %26 : vector<1x32xf32> to vector<16x32xf32>
    %28 = arith.mulf %25, %27 : vector<16x32xf32>
    %c0_14 = arith.constant 0 : index
    %c0_15 = arith.constant 0 : index
    %29 = vector.load %arg6[%c0_14, %c0_15] : memref<1x32xf32, #tpu.memory_space<vmem>>, vector<1x32xf32>
    %30 = vector.broadcast %29 : vector<1x32xf32> to vector<16x32xf32>
    %31 = arith.addf %28, %30 : vector<16x32xf32>
    %c0_16 = arith.constant 0 : index
    %c0_17 = arith.constant 0 : index
    %32 = vector.load %arg7[%c0_16, %c0_17] : memref<16x32xf32, #tpu.memory_space<vmem>>, vector<16x32xf32>
    tpu.vector_store %arg7[%c0_16, %c0_17], %31 {strides = array<i32>} : memref<16x32xf32, #tpu.memory_space<vmem>>, vector<16x32xf32>,
    return
  }
  func.func @transform_0(%arg0: i32) -> (i32, i32) {
    %c0_i32 = arith.constant 0 : i32
    %c0_i32_0 = arith.constant 0 : i32
    return %arg0, %c0_i32 : i32, i32
  }
  func.func @transform_1(%arg0: i32) -> (i32, i32) {
    %c0_i32 = arith.constant 0 : i32
    %c0_i32_0 = arith.constant 0 : i32
    return %arg0, %c0_i32 : i32, i32
  }
  func.func @transform_2(%arg0: i32) -> (i32, i32) {
    %c0_i32 = arith.constant 0 : i32
    %c0_i32_0 = arith.constant 0 : i32
    %c0_i32_1 = arith.constant 0 : i32
    return %c0_i32, %c0_i32_0 : i32, i32
  }
  func.func @transform_3(%arg0: i32) -> (i32, i32) {
    %c0_i32 = arith.constant 0 : i32
    %c0_i32_0 = arith.constant 0 : i32
    %c0_i32_1 = arith.constant 0 : i32
    return %c0_i32, %c0_i32_0 : i32, i32
  }
  func.func @transform_4(%arg0: i32) -> (i32, i32) {
    %c0_i32 = arith.constant 0 : i32
    %c0_i32_0 = arith.constant 0 : i32
    %c0_i32_1 = arith.constant 0 : i32
    return %c0_i32, %c0_i32_0 : i32, i32
  }
  func.func @transform_5(%arg0: i32) -> (i32, i32) {
    %c0_i32 = arith.constant 0 : i32
    %c0_i32_0 = arith.constant 0 : i32
    %c0_i32_1 = arith.constant 0 : i32
    return %c0_i32, %c0_i32_0 : i32, i32
  }
  func.func @transform_6(%arg0: i32) -> (i32, i32) {
    %c0_i32 = arith.constant 0 : i32
    %c0_i32_0 = arith.constant 0 : i32
    return %arg0, %c0_i32 : i32, i32
  }
}

module attributes {stable_mosaic.version = 11 : i64} {
  func.func @_matmul_bias_kernel(%arg0: i32, %arg1: memref<16x32xf32, #tpu.memory_space<vmem>>, %arg2: memref<32x32xbf16, #tpu.memory_space<vmem>>, %arg3: memref<1x32xf32, #tpu.memory_space<vmem>>, %arg4: memref<16x32xbf16, #tpu.memory_space<vmem>>) attributes {dimension_semantics = [#tpu.dimension_semantics<parallel>], iteration_bounds = array<i64: 1>, scalar_prefetch = 0 : i64, scratch_operands = 0 : i64, tpu.core_type = #tpu.core_type<tc>, window_params = [{transform_indices = @transform_0, window_bounds = array<i64: 16, 32>}, {pipeline_mode = #tpu.pipeline_mode<synchronous>, transform_indices = @transform_1, window_bounds = array<i64: 32, 32>}, {pipeline_mode = #tpu.pipeline_mode<synchronous>, transform_indices = @transform_2, window_bounds = array<i64: 1, 32>}, {transform_indices = @transform_3, window_bounds = array<i64: 16, 32>}]} {
    %c0 = arith.constant 0 : index
    %c0_0 = arith.constant 0 : index
    %0 = vector.load %arg1[%c0, %c0_0] : memref<16x32xf32, #tpu.memory_space<vmem>>, vector<16x32xf32>
    %1 = arith.truncf %0 : vector<16x32xf32> to vector<16x32xbf16>
    %c0_1 = arith.constant 0 : index
    %c0_2 = arith.constant 0 : index
    %2 = vector.load %arg2[%c0_1, %c0_2] : memref<32x32xbf16, #tpu.memory_space<vmem>>, vector<32x32xbf16>
    %cst = arith.constant dense<0.000000e+00> : vector<16x32xf32>
    %3 = tpu.matmul %1, %2, %cst {dimension_numbers = #tpu.dot_dimension_numbers<[1], [0], [0], [1], [0, 0, 1, 1], [], []>} : vector<16x32xbf16>, vector<32x32xbf16>, vector<16x32xf32> -> vector<16x32xf32>
    %c0_3 = arith.constant 0 : index
    %c0_4 = arith.constant 0 : index
    %4 = vector.load %arg3[%c0_3, %c0_4] : memref<1x32xf32, #tpu.memory_space<vmem>>, vector<1x32xf32>
    %5 = vector.broadcast %4 : vector<1x32xf32> to vector<16x32xf32>
    %6 = arith.addf %3, %5 : vector<16x32xf32>
    %7 = arith.truncf %6 : vector<16x32xf32> to vector<16x32xbf16>
    %c0_5 = arith.constant 0 : index
    %c0_6 = arith.constant 0 : index
    %8 = vector.load %arg4[%c0_5, %c0_6] : memref<16x32xbf16, #tpu.memory_space<vmem>>, vector<16x32xbf16>
    tpu.vector_store %arg4[%c0_5, %c0_6], %7 {strides = array<i32>} : memref<16x32xbf16, #tpu.memory_space<vmem>>, vector<16x32xbf16>,
    return
  }
  func.func @transform_0(%arg0: i32) -> (i32, i32) {
    %c0_i32 = arith.constant 0 : i32
    %c0_i32_0 = arith.constant 0 : i32
    return %arg0, %c0_i32 : i32, i32
  }
  func.func @transform_1(%arg0: i32) -> (i32, i32) {
    %c0_i32 = arith.constant 0 : i32
    %c0_i32_0 = arith.constant 0 : i32
    %c0_i32_1 = arith.constant 0 : i32
    return %c0_i32, %c0_i32_0 : i32, i32
  }
  func.func @transform_2(%arg0: i32) -> (i32, i32) {
    %c0_i32 = arith.constant 0 : i32
    %c0_i32_0 = arith.constant 0 : i32
    %c0_i32_1 = arith.constant 0 : i32
    return %c0_i32, %c0_i32_0 : i32, i32
  }
  func.func @transform_3(%arg0: i32) -> (i32, i32) {
    %c0_i32 = arith.constant 0 : i32
    %c0_i32_0 = arith.constant 0 : i32
    return %arg0, %c0_i32 : i32, i32
  }
}

module attributes {stable_mosaic.version = 11 : i64} {
  func.func @_matmul_bias_kernel(%arg0: i32, %arg1: memref<32x32xf32, #tpu.memory_space<vmem>>, %arg2: memref<32x128xbf16, #tpu.memory_space<vmem>>, %arg3: memref<1x128xf32, #tpu.memory_space<vmem>>, %arg4: memref<32x128xbf16, #tpu.memory_space<vmem>>) attributes {dimension_semantics = [#tpu.dimension_semantics<parallel>], iteration_bounds = array<i64: 1>, scalar_prefetch = 0 : i64, scratch_operands = 0 : i64, tpu.core_type = #tpu.core_type<tc>, window_params = [{transform_indices = @transform_0, window_bounds = array<i64: 32, 32>}, {pipeline_mode = #tpu.pipeline_mode<synchronous>, transform_indices = @transform_1, window_bounds = array<i64: 32, 128>}, {pipeline_mode = #tpu.pipeline_mode<synchronous>, transform_indices = @transform_2, window_bounds = array<i64: 1, 128>}, {transform_indices = @transform_3, window_bounds = array<i64: 32, 128>}]} {
    %c0 = arith.constant 0 : index
    %c0_0 = arith.constant 0 : index
    %0 = vector.load %arg1[%c0, %c0_0] : memref<32x32xf32, #tpu.memory_space<vmem>>, vector<32x32xf32>
    %1 = arith.truncf %0 : vector<32x32xf32> to vector<32x32xbf16>
    %c0_1 = arith.constant 0 : index
    %c0_2 = arith.constant 0 : index
    %2 = vector.load %arg2[%c0_1, %c0_2] : memref<32x128xbf16, #tpu.memory_space<vmem>>, vector<32x128xbf16>
    %cst = arith.constant dense<0.000000e+00> : vector<32x128xf32>
    %3 = tpu.matmul %1, %2, %cst {dimension_numbers = #tpu.dot_dimension_numbers<[1], [0], [0], [1], [0, 0, 1, 1], [], []>} : vector<32x32xbf16>, vector<32x128xbf16>, vector<32x128xf32> -> vector<32x128xf32>
    %c0_3 = arith.constant 0 : index
    %c0_4 = arith.constant 0 : index
    %4 = vector.load %arg3[%c0_3, %c0_4] : memref<1x128xf32, #tpu.memory_space<vmem>>, vector<1x128xf32>
    %5 = vector.broadcast %4 : vector<1x128xf32> to vector<32x128xf32>
    %6 = arith.addf %3, %5 : vector<32x128xf32>
    %7 = arith.truncf %6 : vector<32x128xf32> to vector<32x128xbf16>
    %c0_5 = arith.constant 0 : index
    %c0_6 = arith.constant 0 : index
    %8 = vector.load %arg4[%c0_5, %c0_6] : memref<32x128xbf16, #tpu.memory_space<vmem>>, vector<32x128xbf16>
    tpu.vector_store %arg4[%c0_5, %c0_6], %7 {strides = array<i32>} : memref<32x128xbf16, #tpu.memory_space<vmem>>, vector<32x128xbf16>,
    return
  }
  func.func @transform_0(%arg0: i32) -> (i32, i32) {
    %c0_i32 = arith.constant 0 : i32
    %c0_i32_0 = arith.constant 0 : i32
    return %arg0, %c0_i32 : i32, i32
  }
  func.func @transform_1(%arg0: i32) -> (i32, i32) {
    %c0_i32 = arith.constant 0 : i32
    %c0_i32_0 = arith.constant 0 : i32
    %c0_i32_1 = arith.constant 0 : i32
    return %c0_i32, %c0_i32_0 : i32, i32
  }
  func.func @transform_2(%arg0: i32) -> (i32, i32) {
    %c0_i32 = arith.constant 0 : i32
    %c0_i32_0 = arith.constant 0 : i32
    %c0_i32_1 = arith.constant 0 : i32
    return %c0_i32, %c0_i32_0 : i32, i32
  }
  func.func @transform_3(%arg0: i32) -> (i32, i32) {
    %c0_i32 = arith.constant 0 : i32
    %c0_i32_0 = arith.constant 0 : i32
    return %arg0, %c0_i32 : i32, i32
  }
}

module attributes {stable_mosaic.version = 11 : i64} {
  func.func @_attention_kernel(%arg0: i32, %arg1: memref<1x4x8x8xbf16, #tpu.memory_space<vmem>>, %arg2: memref<1x4x16x8xbf16, #tpu.memory_space<vmem>>, %arg3: memref<1x4x16x8xbf16, #tpu.memory_space<vmem>>, %arg4: memref<1x4x8x8xbf16, #tpu.memory_space<vmem>>) attributes {dimension_semantics = [#tpu.dimension_semantics<parallel>], iteration_bounds = array<i64: 2>, scalar_prefetch = 0 : i64, scratch_operands = 0 : i64, tpu.core_type = #tpu.core_type<tc>, window_params = [{transform_indices = @transform_0, window_bounds = array<i64: 1, 4, 8, 8>}, {transform_indices = @transform_1, window_bounds = array<i64: 1, 4, 16, 8>}, {transform_indices = @transform_2, window_bounds = array<i64: 1, 4, 16, 8>}, {transform_indices = @transform_3, window_bounds = array<i64: 1, 4, 8, 8>}]} {
    %c0 = arith.constant 0 : index
    %c0_0 = arith.constant 0 : index
    %c0_1 = arith.constant 0 : index
    %c0_2 = arith.constant 0 : index
    %0 = vector.load %arg1[%c0, %c0_0, %c0_1, %c0_2] : memref<1x4x8x8xbf16, #tpu.memory_space<vmem>>, vector<1x4x8x8xbf16>
    %1 = vector.shape_cast %0 : vector<1x4x8x8xbf16> to vector<4x8x8xbf16>
    %c0_3 = arith.constant 0 : index
    %c0_4 = arith.constant 0 : index
    %c0_5 = arith.constant 0 : index
    %c0_6 = arith.constant 0 : index
    %2 = vector.load %arg2[%c0_3, %c0_4, %c0_5, %c0_6] : memref<1x4x16x8xbf16, #tpu.memory_space<vmem>>, vector<1x4x16x8xbf16>
    %3 = vector.shape_cast %2 : vector<1x4x16x8xbf16> to vector<4x16x8xbf16>
    %c0_7 = arith.constant 0 : index
    %c0_8 = arith.constant 0 : index
    %c0_9 = arith.constant 0 : index
    %c0_10 = arith.constant 0 : index
    %4 = vector.load %arg3[%c0_7, %c0_8, %c0_9, %c0_10] : memref<1x4x16x8xbf16, #tpu.memory_space<vmem>>, vector<1x4x16x8xbf16>
    %5 = vector.shape_cast %4 : vector<1x4x16x8xbf16> to vector<4x16x8xbf16>
    "tpu.trace_start"() <{level = 10 : i32, message = "hle,hse->hls"}> : () -> ()
    %cst = arith.constant dense<0.000000e+00> : vector<4x8x16xf32>
    %6 = tpu.matmul %1, %3, %cst {dimension_numbers = #tpu.dot_dimension_numbers<[2], [2], [1], [1], [0, 0, 0, 1, 1, 1], [0], [0]>} : vector<4x8x8xbf16>, vector<4x16x8xbf16>, vector<4x8x16xf32> -> vector<4x8x16xf32>
    "tpu.trace_stop"() : () -> ()
    %cst_11 = arith.constant 0.353553385 : f32
    %7 = vector.broadcast %cst_11 : f32 to vector<4x8x16xf32>
    %8 = arith.mulf %6, %7 : vector<4x8x16xf32>
    %cst_12 = arith.constant dense<0xFF800000> : vector<4x8xf32>
    %9 = vector.multi_reduction <maximumf>, %8, %cst_12 [2] : vector<4x8x16xf32> to vector<4x8xf32>
    %10 = vector.shape_cast %9 : vector<4x8xf32> to vector<4x8x1xf32>
    %11 = vector.broadcast %10 : vector<4x8x1xf32> to vector<4x8x16xf32>
    %12 = arith.subf %8, %11 : vector<4x8x16xf32>
    %13 = math.exp %12 : vector<4x8x16xf32>
    %cst_13 = arith.constant dense<0.000000e+00> : vector<4x8xf32>
    %14 = vector.multi_reduction <add>, %13, %cst_13 [2] : vector<4x8x16xf32> to vector<4x8xf32>
    %15 = vector.shape_cast %14 : vector<4x8xf32> to vector<4x8x1xf32>
    %16 = tpu.reciprocal %15 {approx = true} : vector<4x8x1xf32> -> vector<4x8x1xf32>
    %17 = vector.broadcast %16 : vector<4x8x1xf32> to vector<4x8x16xf32>
    %18 = arith.mulf %13, %17 : vector<4x8x16xf32>
    %19 = arith.truncf %18 : vector<4x8x16xf32> to vector<4x8x16xbf16>
    "tpu.trace_start"() <{level = 10 : i32, message = "hls,hse->hle"}> : () -> ()
    %cst_14 = arith.constant dense<0.000000e+00> : vector<4x8x8xf32>
    %20 = tpu.matmul %19, %5, %cst_14 {dimension_numbers = #tpu.dot_dimension_numbers<[2], [1], [1], [2], [0, 0, 0, 1, 1, 2], [0], [0]>} : vector<4x8x16xbf16>, vector<4x16x8xbf16>, vector<4x8x8xf32> -> vector<4x8x8xf32>
    "tpu.trace_stop"() : () -> ()
    %21 = arith.truncf %20 : vector<4x8x8xf32> to vector<4x8x8xbf16>
    %c0_15 = arith.constant 0 : index
    %c0_16 = arith.constant 0 : index
    %c0_17 = arith.constant 0 : index
    %c0_18 = arith.constant 0 : index
    %22 = vector.load %arg4[%c0_15, %c0_16, %c0_17, %c0_18] : memref<1x4x8x8xbf16, #tpu.memory_space<vmem>>, vector<1x4x8x8xbf16>
    %23 = vector.shape_cast %22 : vector<1x4x8x8xbf16> to vector<4x8x8xbf16>
    %24 = vector.shape_cast %21 : vector<4x8x8xbf16> to vector<1x4x8x8xbf16>
    tpu.vector_store %arg4[%c0_15, %c0_16, %c0_17, %c0_18], %24 {strides = array<i32>} : memref<1x4x8x8xbf16, #tpu.memory_space<vmem>>, vector<1x4x8x8xbf16>,
    return
  }
  func.func @transform_0(%arg0: i32) -> (i32, i32, i32, i32) {
    %c0_i32 = arith.constant 0 : i32
    %c0_i32_0 = arith.constant 0 : i32
    %c0_i32_1 = arith.constant 0 : i32
    %c0_i32_2 = arith.constant 0 : i32
    return %arg0, %c0_i32, %c0_i32_0, %c0_i32_1 : i32, i32, i32, i32
  }
  func.func @transform_1(%arg0: i32) -> (i32, i32, i32, i32) {
    %c0_i32 = arith.constant 0 : i32
    %c0_i32_0 = arith.constant 0 : i32
    %c0_i32_1 = arith.constant 0 : i32
    %c0_i32_2 = arith.constant 0 : i32
    return %arg0, %c0_i32, %c0_i32_0, %c0_i32_1 : i32, i32, i32, i32
  }
  func.func @transform_2(%arg0: i32) -> (i32, i32, i32, i32) {
    %c0_i32 = arith.constant 0 : i32
    %c0_i32_0 = arith.constant 0 : i32
    %c0_i32_1 = arith.constant 0 : i32
    %c0_i32_2 = arith.constant 0 : i32
    return %arg0, %c0_i32, %c0_i32_0, %c0_i32_1 : i32, i32, i32, i32
  }
  func.func @transform_3(%arg0: i32) -> (i32, i32, i32, i32) {
    %c0_i32 = arith.constant 0 : i32
    %c0_i32_0 = arith.constant 0 : i32
    %c0_i32_1 = arith.constant 0 : i32
    %c0_i32_2 = arith.constant 0 : i32
    return %arg0, %c0_i32, %c0_i32_0, %c0_i32_1 : i32, i32, i32, i32
  }
}

module attributes {stable_mosaic.version = 11 : i64} {
  func.func @_ffn_ln_kernel(%arg0: i32, %arg1: memref<16x32xf32, #tpu.memory_space<vmem>>, %arg2: memref<32x64xbf16, #tpu.memory_space<vmem>>, %arg3: memref<1x64xf32, #tpu.memory_space<vmem>>, %arg4: memref<64x32xbf16, #tpu.memory_space<vmem>>, %arg5: memref<1x32xf32, #tpu.memory_space<vmem>>, %arg6: memref<1x32xf32, #tpu.memory_space<vmem>>, %arg7: memref<1x32xf32, #tpu.memory_space<vmem>>, %arg8: memref<16x32xf32, #tpu.memory_space<vmem>>) attributes {dimension_semantics = [#tpu.dimension_semantics<parallel>], iteration_bounds = array<i64: 1>, scalar_prefetch = 0 : i64, scratch_operands = 0 : i64, tpu.core_type = #tpu.core_type<tc>, window_params = [{transform_indices = @transform_0, window_bounds = array<i64: 16, 32>}, {pipeline_mode = #tpu.pipeline_mode<synchronous>, transform_indices = @transform_1, window_bounds = array<i64: 32, 64>}, {pipeline_mode = #tpu.pipeline_mode<synchronous>, transform_indices = @transform_2, window_bounds = array<i64: 1, 64>}, {pipeline_mode = #tpu.pipeline_mode<synchronous>, transform_indices = @transform_3, window_bounds = array<i64: 64, 32>}, {pipeline_mode = #tpu.pipeline_mode<synchronous>, transform_indices = @transform_4, window_bounds = array<i64: 1, 32>}, {pipeline_mode = #tpu.pipeline_mode<synchronous>, transform_indices = @transform_5, window_bounds = array<i64: 1, 32>}, {pipeline_mode = #tpu.pipeline_mode<synchronous>, transform_indices = @transform_6, window_bounds = array<i64: 1, 32>}, {transform_indices = @transform_7, window_bounds = array<i64: 16, 32>}]} {
    %c0 = arith.constant 0 : index
    %c0_0 = arith.constant 0 : index
    %0 = vector.load %arg1[%c0, %c0_0] : memref<16x32xf32, #tpu.memory_space<vmem>>, vector<16x32xf32>
    %1 = arith.truncf %0 : vector<16x32xf32> to vector<16x32xbf16>
    %c0_1 = arith.constant 0 : index
    %c0_2 = arith.constant 0 : index
    %2 = vector.load %arg2[%c0_1, %c0_2] : memref<32x64xbf16, #tpu.memory_space<vmem>>, vector<32x64xbf16>
    %cst = arith.constant dense<0.000000e+00> : vector<16x64xf32>
    %3 = tpu.matmul %1, %2, %cst {dimension_numbers = #tpu.dot_dimension_numbers<[1], [0], [0], [1], [0, 0, 1, 1], [], []>} : vector<16x32xbf16>, vector<32x64xbf16>, vector<16x64xf32> -> vector<16x64xf32>
    %c0_3 = arith.constant 0 : index
    %c0_4 = arith.constant 0 : index
    %4 = vector.load %arg3[%c0_3, %c0_4] : memref<1x64xf32, #tpu.memory_space<vmem>>, vector<1x64xf32>
    %5 = vector.broadcast %4 : vector<1x64xf32> to vector<16x64xf32>
    %6 = arith.addf %3, %5 : vector<16x64xf32>
    %cst_5 = arith.constant 0.000000e+00 : f32
    %7 = vector.broadcast %cst_5 : f32 to vector<16x64xf32>
    %8 = arith.maximumf %6, %7 : vector<16x64xf32>
    %9 = arith.truncf %8 : vector<16x64xf32> to vector<16x64xbf16>
    %c0_6 = arith.constant 0 : index
    %c0_7 = arith.constant 0 : index
    %10 = vector.load %arg4[%c0_6, %c0_7] : memref<64x32xbf16, #tpu.memory_space<vmem>>, vector<64x32xbf16>
    %cst_8 = arith.constant dense<0.000000e+00> : vector<16x32xf32>
    %11 = tpu.matmul %9, %10, %cst_8 {dimension_numbers = #tpu.dot_dimension_numbers<[1], [0], [0], [1], [0, 0, 1, 1], [], []>} : vector<16x64xbf16>, vector<64x32xbf16>, vector<16x32xf32> -> vector<16x32xf32>
    %c0_9 = arith.constant 0 : index
    %c0_10 = arith.constant 0 : index
    %12 = vector.load %arg5[%c0_9, %c0_10] : memref<1x32xf32, #tpu.memory_space<vmem>>, vector<1x32xf32>
    %13 = vector.broadcast %12 : vector<1x32xf32> to vector<16x32xf32>
    %14 = arith.addf %11, %13 : vector<16x32xf32>
    %15 = arith.addf %0, %14 : vector<16x32xf32>
    %cst_11 = arith.constant dense<0.000000e+00> : vector<16xf32>
    %16 = vector.multi_reduction <add>, %15, %cst_11 [1] : vector<16x32xf32> to vector<16xf32>
    %17 = vector.shape_cast %16 : vector<16xf32> to vector<16x1xf32>
    %cst_12 = arith.constant 3.200000e+01 : f32
    %18 = vector.broadcast %cst_12 : f32 to vector<16x1xf32>
    %19 = arith.divf %17, %18 : vector<16x1xf32>
    %20 = vector.broadcast %19 : vector<16x1xf32> to vector<16x32xf32>
    %21 = arith.subf %15, %20 : vector<16x32xf32>
    %22 = arith.mulf %21, %21 : vector<16x32xf32>
    %cst_13 = arith.constant dense<0.000000e+00> : vector<16xf32>
    %23 = vector.multi_reduction <add>, %22, %cst_13 [1] : vector<16x32xf32> to vector<16xf32>
    %24 = vector.shape_cast %23 : vector<16xf32> to vector<16x1xf32>
    %cst_14 = arith.constant 3.200000e+01 : f32
    %25 = vector.broadcast %cst_14 : f32 to vector<16x1xf32>
    %26 = arith.divf %24, %25 : vector<16x1xf32>
    %27 = vector.broadcast %19 : vector<16x1xf32> to vector<16x32xf32>
    %28 = arith.subf %15, %27 : vector<16x32xf32>
    %cst_15 = arith.constant 9.99999974E-6 : f32
    %29 = vector.broadcast %cst_15 : f32 to vector<16x1xf32>
    %30 = arith.addf %26, %29 : vector<16x1xf32>
    %31 = math.rsqrt %30 : vector<16x1xf32>
    %32 = vector.broadcast %31 : vector<16x1xf32> to vector<16x32xf32>
    %33 = arith.mulf %28, %32 : vector<16x32xf32>
    %c0_16 = arith.constant 0 : index
    %c0_17 = arith.constant 0 : index
    %34 = vector.load %arg6[%c0_16, %c0_17] : memref<1x32xf32, #tpu.memory_space<vmem>>, vector<1x32xf32>
    %35 = vector.broadcast %34 : vector<1x32xf32> to vector<16x32xf32>
    %36 = arith.mulf %33, %35 : vector<16x32xf32>
    %c0_18 = arith.constant 0 : index
    %c0_19 = arith.constant 0 : index
    %37 = vector.load %arg7[%c0_18, %c0_19] : memref<1x32xf32, #tpu.memory_space<vmem>>, vector<1x32xf32>
    %38 = vector.broadcast %37 : vector<1x32xf32> to vector<16x32xf32>
    %39 = arith.addf %36, %38 : vector<16x32xf32>
    %c0_20 = arith.constant 0 : index
    %c0_21 = arith.constant 0 : index
    %40 = vector.load %arg8[%c0_20, %c0_21] : memref<16x32xf32, #tpu.memory_space<vmem>>, vector<16x32xf32>
    tpu.vector_store %arg8[%c0_20, %c0_21], %39 {strides = array<i32>} : memref<16x32xf32, #tpu.memory_space<vmem>>, vector<16x32xf32>,
    return
  }
  func.func @transform_0(%arg0: i32) -> (i32, i32) {
    %c0_i32 = arith.constant 0 : i32
    %c0_i32_0 = arith.constant 0 : i32
    return %arg0, %c0_i32 : i32, i32
  }
  func.func @transform_1(%arg0: i32) -> (i32, i32) {
    %c0_i32 = arith.constant 0 : i32
    %c0_i32_0 = arith.constant 0 : i32
    %c0_i32_1 = arith.constant 0 : i32
    return %c0_i32, %c0_i32_0 : i32, i32
  }
  func.func @transform_2(%arg0: i32) -> (i32, i32) {
    %c0_i32 = arith.constant 0 : i32
    %c0_i32_0 = arith.constant 0 : i32
    %c0_i32_1 = arith.constant 0 : i32
    return %c0_i32, %c0_i32_0 : i32, i32
  }
  func.func @transform_3(%arg0: i32) -> (i32, i32) {
    %c0_i32 = arith.constant 0 : i32
    %c0_i32_0 = arith.constant 0 : i32
    %c0_i32_1 = arith.constant 0 : i32
    return %c0_i32, %c0_i32_0 : i32, i32
  }
  func.func @transform_4(%arg0: i32) -> (i32, i32) {
    %c0_i32 = arith.constant 0 : i32
    %c0_i32_0 = arith.constant 0 : i32
    %c0_i32_1 = arith.constant 0 : i32
    return %c0_i32, %c0_i32_0 : i32, i32
  }
  func.func @transform_5(%arg0: i32) -> (i32, i32) {
    %c0_i32 = arith.constant 0 : i32
    %c0_i32_0 = arith.constant 0 : i32
    %c0_i32_1 = arith.constant 0 : i32
    return %c0_i32, %c0_i32_0 : i32, i32
  }
  func.func @transform_6(%arg0: i32) -> (i32, i32) {
    %c0_i32 = arith.constant 0 : i32
    %c0_i32_0 = arith.constant 0 : i32
    %c0_i32_1 = arith.constant 0 : i32
    return %c0_i32, %c0_i32_0 : i32, i32
  }
  func.func @transform_7(%arg0: i32) -> (i32, i32) {
    %c0_i32 = arith.constant 0 : i32
    %c0_i32_0 = arith.constant 0 : i32
    return %arg0, %c0_i32 : i32, i32
  }
}

module attributes {stable_mosaic.version = 11 : i64} {
  func.func @_ln_proj_kernel(%arg0: i32, %arg1: memref<16x32xf32, #tpu.memory_space<vmem>>, %arg2: memref<1x32xf32, #tpu.memory_space<vmem>>, %arg3: memref<1x32xf32, #tpu.memory_space<vmem>>, %arg4: memref<32x128xbf16, #tpu.memory_space<vmem>>, %arg5: memref<1x128xf32, #tpu.memory_space<vmem>>, %arg6: memref<16x128xf32, #tpu.memory_space<vmem>>) attributes {dimension_semantics = [#tpu.dimension_semantics<parallel>], iteration_bounds = array<i64: 1>, scalar_prefetch = 0 : i64, scratch_operands = 0 : i64, tpu.core_type = #tpu.core_type<tc>, window_params = [{transform_indices = @transform_0, window_bounds = array<i64: 16, 32>}, {pipeline_mode = #tpu.pipeline_mode<synchronous>, transform_indices = @transform_1, window_bounds = array<i64: 1, 32>}, {pipeline_mode = #tpu.pipeline_mode<synchronous>, transform_indices = @transform_2, window_bounds = array<i64: 1, 32>}, {pipeline_mode = #tpu.pipeline_mode<synchronous>, transform_indices = @transform_3, window_bounds = array<i64: 32, 128>}, {pipeline_mode = #tpu.pipeline_mode<synchronous>, transform_indices = @transform_4, window_bounds = array<i64: 1, 128>}, {transform_indices = @transform_5, window_bounds = array<i64: 16, 128>}]} {
    %c0 = arith.constant 0 : index
    %c0_0 = arith.constant 0 : index
    %0 = vector.load %arg1[%c0, %c0_0] : memref<16x32xf32, #tpu.memory_space<vmem>>, vector<16x32xf32>
    %cst = arith.constant dense<0.000000e+00> : vector<16xf32>
    %1 = vector.multi_reduction <add>, %0, %cst [1] : vector<16x32xf32> to vector<16xf32>
    %2 = vector.shape_cast %1 : vector<16xf32> to vector<16x1xf32>
    %cst_1 = arith.constant 3.200000e+01 : f32
    %3 = vector.broadcast %cst_1 : f32 to vector<16x1xf32>
    %4 = arith.divf %2, %3 : vector<16x1xf32>
    %5 = vector.broadcast %4 : vector<16x1xf32> to vector<16x32xf32>
    %6 = arith.subf %0, %5 : vector<16x32xf32>
    %7 = arith.mulf %6, %6 : vector<16x32xf32>
    %cst_2 = arith.constant dense<0.000000e+00> : vector<16xf32>
    %8 = vector.multi_reduction <add>, %7, %cst_2 [1] : vector<16x32xf32> to vector<16xf32>
    %9 = vector.shape_cast %8 : vector<16xf32> to vector<16x1xf32>
    %cst_3 = arith.constant 3.200000e+01 : f32
    %10 = vector.broadcast %cst_3 : f32 to vector<16x1xf32>
    %11 = arith.divf %9, %10 : vector<16x1xf32>
    %12 = vector.broadcast %4 : vector<16x1xf32> to vector<16x32xf32>
    %13 = arith.subf %0, %12 : vector<16x32xf32>
    %cst_4 = arith.constant 9.99999974E-6 : f32
    %14 = vector.broadcast %cst_4 : f32 to vector<16x1xf32>
    %15 = arith.addf %11, %14 : vector<16x1xf32>
    %16 = math.rsqrt %15 : vector<16x1xf32>
    %17 = vector.broadcast %16 : vector<16x1xf32> to vector<16x32xf32>
    %18 = arith.mulf %13, %17 : vector<16x32xf32>
    %c0_5 = arith.constant 0 : index
    %c0_6 = arith.constant 0 : index
    %19 = vector.load %arg2[%c0_5, %c0_6] : memref<1x32xf32, #tpu.memory_space<vmem>>, vector<1x32xf32>
    %20 = vector.broadcast %19 : vector<1x32xf32> to vector<16x32xf32>
    %21 = arith.mulf %18, %20 : vector<16x32xf32>
    %c0_7 = arith.constant 0 : index
    %c0_8 = arith.constant 0 : index
    %22 = vector.load %arg3[%c0_7, %c0_8] : memref<1x32xf32, #tpu.memory_space<vmem>>, vector<1x32xf32>
    %23 = vector.broadcast %22 : vector<1x32xf32> to vector<16x32xf32>
    %24 = arith.addf %21, %23 : vector<16x32xf32>
    %25 = arith.truncf %24 : vector<16x32xf32> to vector<16x32xbf16>
    %c0_9 = arith.constant 0 : index
    %c0_10 = arith.constant 0 : index
    %26 = vector.load %arg4[%c0_9, %c0_10] : memref<32x128xbf16, #tpu.memory_space<vmem>>, vector<32x128xbf16>
    %cst_11 = arith.constant dense<0.000000e+00> : vector<16x128xf32>
    %27 = tpu.matmul %25, %26, %cst_11 {dimension_numbers = #tpu.dot_dimension_numbers<[1], [0], [0], [1], [0, 0, 1, 1], [], []>} : vector<16x32xbf16>, vector<32x128xbf16>, vector<16x128xf32> -> vector<16x128xf32>
    %c0_12 = arith.constant 0 : index
    %c0_13 = arith.constant 0 : index
    %28 = vector.load %arg5[%c0_12, %c0_13] : memref<1x128xf32, #tpu.memory_space<vmem>>, vector<1x128xf32>
    %29 = vector.broadcast %28 : vector<1x128xf32> to vector<16x128xf32>
    %30 = arith.addf %27, %29 : vector<16x128xf32>
    %c0_14 = arith.constant 0 : index
    %c0_15 = arith.constant 0 : index
    %31 = vector.load %arg6[%c0_14, %c0_15] : memref<16x128xf32, #tpu.memory_space<vmem>>, vector<16x128xf32>
    tpu.vector_store %arg6[%c0_14, %c0_15], %30 {strides = array<i32>} : memref<16x128xf32, #tpu.memory_space<vmem>>, vector<16x128xf32>,
    return
  }
  func.func @transform_0(%arg0: i32) -> (i32, i32) {
    %c0_i32 = arith.constant 0 : i32
    %c0_i32_0 = arith.constant 0 : i32
    return %arg0, %c0_i32 : i32, i32
  }
  func.func @transform_1(%arg0: i32) -> (i32, i32) {
    %c0_i32 = arith.constant 0 : i32
    %c0_i32_0 = arith.constant 0 : i32
    %c0_i32_1 = arith.constant 0 : i32
    return %c0_i32, %c0_i32_0 : i32, i32
  }
  func.func @transform_2(%arg0: i32) -> (i32, i32) {
    %c0_i32 = arith.constant 0 : i32
    %c0_i32_0 = arith.constant 0 : i32
    %c0_i32_1 = arith.constant 0 : i32
    return %c0_i32, %c0_i32_0 : i32, i32
  }
  func.func @transform_3(%arg0: i32) -> (i32, i32) {
    %c0_i32 = arith.constant 0 : i32
    %c0_i32_0 = arith.constant 0 : i32
    %c0_i32_1 = arith.constant 0 : i32
    return %c0_i32, %c0_i32_0 : i32, i32
  }
  func.func @transform_4(%arg0: i32) -> (i32, i32) {
    %c0_i32 = arith.constant 0 : i32
    %c0_i32_0 = arith.constant 0 : i32
    %c0_i32_1 = arith.constant 0 : i32
    return %c0_i32, %c0_i32_0 : i32, i32
  }
  func.func @transform_5(%arg0: i32) -> (i32, i32) {
    %c0_i32 = arith.constant 0 : i32
    %c0_i32_0 = arith.constant 0 : i32
    return %arg0, %c0_i32 : i32, i32
  }
}

</mosaic_0001>

<bundles_post_ra>
// kernel: decoder_forward.17
= control target key start
LH: loop header
LB: loop body
LE: loop exit
PB: predicated region body
PF: predicated region fallthrough
CT: control target
= control target key end

     0   :  { %vm38_vm0 = vcmask 261120   ;;  %vm58_vm1 = vcmask 781312   ;;  %s118_s1 = inlined_call_operand.vmem [shape: bf16[32,96], index: 1, kind: input, shape index: {}]   ;;  %s119_s0 = inlined_call_operand.vmem [shape: f32[16,32], index: 0, kind: input, shape index: {}]   ;;  %s120_s2 = inlined_call_operand.vmem [shape: f32[1,96], index: 2, kind: input, shape index: {}]   ;;  %s121_s3 = inlined_call_operand.vmem [shape: bf16[16,96], index: 3, kind: output, shape index: {}]  }
   0x1   :  { %v75_v0 = vld [vmem:[%s118_s1 + $0x8] sm:$0xff]  ;;  %v74_v1 = vld [vmem:[%s118_s1] sm:$0xff] }
   0x2   :  { %48 = vmatpush.bf16.msra.mxu0 %v75_v0  ;;  %v15_v2 = vld [vmem:[%s119_s0] sm:$0xff]  ;;  %v16_v3 = vld [vmem:[%s119_s0 + $0x8] sm:$0xff] }
   0x3   :  { %v17_v4 = vpack.c.bf16 %v16_v3, %v15_v2  ;;  %v76_v5 = vld [vmem:[%s120_s2] ss:$0 sm:$0xff] }
   0x6   :  { %49 = vmatpush.bf16.msra.mxu0 %v74_v1 }
   0x9   :  { %73 = vmatmul.msk.bf16.vlgmr.msra.gmra.mxu0 %vm38_vm0, %v17_v4 }
  0x86   :  { %v51_v6 = vpop.f32.mrf.mxu0 }
  0x87   :  { %v52_v7 = vadd.f32 %v76_v5, %v51_v6 }
  0x89   :  { %v56_v8 = vpack.c.bf16 %v52_v7, %v52_v7 }
  0x8b   :  { %59 = vst.msk [vmem:[%s121_s3] sm:$0xf] %vm58_vm1, %v56_v8 }
  0x8e   :  { %v53_v9 = vpop.f32.mrf.mxu0 }
  0x8f   :  { %v54_v10 = vadd.f32 %v76_v5, %v53_v9 }
  0x91   :  { %v57_v11 = vpack.c.bf16 %v54_v10, %v54_v10 }
  0x93   :  { %60 = vst.msk [vmem:[%s121_s3 + $0x4] sm:$0xf] %vm58_vm1, %v57_v11 }

// kernel: decoder_forward.19
= control target key start
LH: loop header
LB: loop body
LE: loop exit
PB: predicated region body
PF: predicated region fallthrough
CT: control target
= control target key end

     0   :  { %vm51_vm0 = vcmask 261120   ;;  %v168_v14 = vmov 32.0   ;;  %s241_s2 = inlined_call_operand.vmem [shape: bf16[32,32], index: 2, kind: input, shape index: {}]   ;;  %s242_s3 = inlined_call_operand.vmem [shape: f32[1,32], index: 3, kind: input, shape index: {}]   ;;  %s243_s0 = inlined_call_operand.vmem [shape: bf16[16,32], index: 0, kind: input, shape index: {}]   ;;  %s244_s1 = inlined_call_operand.vmem [shape: f32[16,32], index: 1, kind: input, shape index: {}]   ;;  %s245_s4 = inlined_call_operand.vmem [shape: f32[1,32], index: 4, kind: input, shape index: {}]   ;;  %s246_s5 = inlined_call_operand.vmem [shape: f32[1,32], index: 5, kind: input, shape index: {}]   ;;  %s247_s6 = inlined_call_operand.vmem [shape: f32[16,32], index: 6, kind: output, shape index: {}]  }
   0x1   :  { %v157_v0 = vld [vmem:[%s241_s2 + $0x8] sm:$0xff]  ;;  %v156_v1 = vld [vmem:[%s241_s2] sm:$0xff]  ;;  %162 = vrcp.f32 %v168_v14 }
   0x2   :  { %61 = vmatpush.bf16.msra.mxu0 %v157_v0  ;;  %v155_v2 = vld [vmem:[%s243_s0] sm:$0xff]  ;;  %v70_v10 = vld [vmem:[%s244_s1 + $0x8] sm:$0xff] }
   0x3   :  { %v159_v3 = vld [vmem:[%s242_s3] ss:$0 sm:$0xff] }
   0x4   :  { %v69_v5 = vld [vmem:[%s244_s1] sm:$0xff] }
   0x5   :  { %v160_v45 = vld [vmem:[%s245_s4] ss:$0 sm:$0xff] }
   0x6   :  { %62 = vmatpush.bf16.msra.mxu0 %v156_v1  ;;  %v161_v48 = vld [vmem:[%s246_s5] ss:$0 sm:$0xff] }
   0x7   :  { %v163_v15 = vpop.eup %162 }
   0x8   :  { %v80_v16 = vmul.f32 32.0, %v163_v15  ;;  %vm84_vm1 = vweird.f32 %v163_v15 }
   0x9   :  { %154 = vmatmul.msk.bf16.vlgmr.msra.gmra.mxu0 %vm51_vm0, %v155_v2 }
   0xa   :  { %v81_v17 = vsub.f32 1.0, %v80_v16 }
   0xc   :  { %v82_v18 = vmul.f32 %v163_v15, %v81_v17 }
   0xe   :  { %v83_v19 = vadd.f32 %v163_v15, %v82_v18 }
  0x10   :  { %v85_v20 = vsel %vm84_vm1, %v163_v15, %v83_v19 }
  0x86   :  { %v64_v4 = vpop.f32.mrf.mxu0 }
  0x87   :  { %v65_v6 = vadd.f32 %v159_v3, %v64_v4 }
  0x89   :  { %v71_v7 = vadd.f32 %v69_v5, %v65_v6 }
  0x8b   :  { %v73_v8 = vsel %vm51_vm0, %v71_v7, 0.0 }
  0x8c   :  { %74 = vadd.xlane.f32.xlu0 %v73_v8 }
  0x8e   :  { %v66_v9 = vpop.f32.mrf.mxu0 }
  0x8f   :  { %v67_v11 = vadd.f32 %v159_v3, %v66_v9 }
  0x91   :  { %v72_v12 = vadd.f32 %v70_v10, %v67_v11 }
  0x93   :  { %v76_v13 = vsel %vm51_vm0, %v72_v12, 0.0 }
  0x94   :  { %77 = vadd.xlane.f32.xlu0 %v76_v13 }
  0xff   :  { %v75_v21 = vpop.xlane.xlu0 %74 }
 0x100   :  { %v86_v22 = vmul.f32 %v85_v20, %v75_v21 }
 0x102   :  { %v88_v23 = vsub.f32 %v71_v7, %v86_v22 }
 0x104   :  { %v90_v24 = vmul.f32 %v88_v23, %v88_v23 }
 0x106   :  { %v92_v25 = vsel %vm51_vm0, %v90_v24, 0.0 }
 0x107   :  { %93 = vadd.xlane.f32.xlu1 %v92_v25  ;;  %v78_v26 = vpop.xlane.xlu0 %77 }
 0x108   :  { %v87_v27 = vmul.f32 %v85_v20, %v78_v26 }
 0x10a   :  { %v89_v28 = vsub.f32 %v72_v12, %v87_v27 }
 0x10c   :  { %v91_v29 = vmul.f32 %v89_v28, %v89_v28 }
 0x10e   :  { %v95_v30 = vsel %vm51_vm0, %v91_v29, 0.0 }
 0x10f   :  { %96 = vadd.xlane.f32.xlu1 %v95_v30 }
 0x17a   :  { %v94_v31 = vpop.xlane.xlu1 %93 }
 0x17b   :  { %v98_v32 = vmul.f32 %v94_v31, %v85_v20 }
 0x17d   :  { %v100_v33 = vadd.f32 1e-05, %v98_v32 }
 0x17f   :  { %164 = vrsqrt.f32 %v100_v33  ;;  %vm108_vm3 = vweird.f32 %v100_v33 }
 0x182   :  { %v97_v34 = vpop.xlane.xlu1 %96 }
 0x183   :  { %v99_v35 = vmul.f32 %v97_v34, %v85_v20 }
 0x185   :  { %v165_v36 = vpop.eup %164  ;;  %v101_v37 = vadd.f32 1e-05, %v99_v35 }
 0x186   :  { %v103_v38 = vmul.f32 %v165_v36, %v100_v33  ;;  %vm109_vm2 = vweird.f32 %v165_v36 }
 0x187   :  { %166 = vrsqrt.f32 %v101_v37  ;;  %vm110_vm4 = vmor %vm108_vm3, %vm109_vm2  ;;  %vm118_vm6 = vweird.f32 %v101_v37 }
 0x188   :  { %v104_v39 = vmul.f32 %v165_v36, %v103_v38 }
 0x18a   :  { %v105_v40 = vmul.f32 0.5, %v104_v39 }
 0x18c   :  { %v106_v41 = vsub.f32 1.5, %v105_v40 }
 0x18d   :  { %v167_v42 = vpop.eup %166 }
 0x18e   :  { %v107_v43 = vmul.f32 %v165_v36, %v106_v41  ;;  %v113_v44 = vmul.f32 %v167_v42, %v101_v37  ;;  %vm119_vm5 = vweird.f32 %v167_v42 }
 0x18f   :  { %vm120_vm7 = vmor %vm118_vm6, %vm119_vm5 }
 0x190   :  { %v111_v46 = vsel %vm110_vm4, %v165_v36, %v107_v43  ;;  %v114_v47 = vmul.f32 %v167_v42, %v113_v44 }
 0x191   :  { %v122_v49 = vmul.f32 %v111_v46, %v88_v23 }
 0x192   :  { %v115_v50 = vmul.f32 0.5, %v114_v47 }
 0x193   :  { %v128_v51 = vmul.f32 %v160_v45, %v122_v49 }
 0x194   :  { %v116_v52 = vsub.f32 1.5, %v115_v50 }
 0x195   :  { %v134_v53 = vadd.f32 %v161_v48, %v128_v51 }
 0x196   :  { %v117_v54 = vmul.f32 %v167_v42, %v116_v52 }
 0x197   :  { %136 = vst.msk [vmem:[%s247_s6] sm:$0xff] %vm51_vm0, %v134_v53 }
 0x198   :  { %v121_v55 = vsel %vm120_vm7, %v167_v42, %v117_v54 }
 0x199   :  { %v123_v56 = vmul.f32 %v121_v55, %v89_v28 }
 0x19b   :  { %v129_v57 = vmul.f32 %v160_v45, %v123_v56 }
 0x19d   :  { %v135_v58 = vadd.f32 %v161_v48, %v129_v57 }
 0x19f   :  { %137 = vst.msk [vmem:[%s247_s6 + $0x8] sm:$0xff] %vm51_vm0, %v135_v58 }

// kernel: decoder_forward.20
= control target key start
LH: loop header
LB: loop body
LE: loop exit
PB: predicated region body
PF: predicated region fallthrough
CT: control target
= control target key end

     0   :  { %vm38_vm0 = vcmask 261120   ;;  %vm58_vm1 = vcmask 257024   ;;  %s118_s1 = inlined_call_operand.vmem [shape: bf16[32,32], index: 1, kind: input, shape index: {}]   ;;  %s119_s0 = inlined_call_operand.vmem [shape: f32[16,32], index: 0, kind: input, shape index: {}]   ;;  %s120_s2 = inlined_call_operand.vmem [shape: f32[1,32], index: 2, kind: input, shape index: {}]   ;;  %s121_s3 = inlined_call_operand.vmem [shape: bf16[16,32], index: 3, kind: output, shape index: {}]  }
   0x1   :  { %v75_v0 = vld [vmem:[%s118_s1 + $0x8] sm:$0xff]  ;;  %v74_v1 = vld [vmem:[%s118_s1] sm:$0xff] }
   0x2   :  { %48 = vmatpush.bf16.msra.mxu0 %v75_v0  ;;  %v15_v2 = vld [vmem:[%s119_s0] sm:$0xff]  ;;  %v16_v3 = vld [vmem:[%s119_s0 + $0x8] sm:$0xff] }
   0x3   :  { %v17_v4 = vpack.c.bf16 %v16_v3, %v15_v2  ;;  %v76_v5 = vld [vmem:[%s120_s2] ss:$0 sm:$0xff] }
   0x6   :  { %49 = vmatpush.bf16.msra.mxu0 %v74_v1 }
   0x9   :  { %73 = vmatmul.msk.bf16.vlgmr.msra.gmra.mxu0 %vm38_vm0, %v17_v4 }
  0x86   :  { %v51_v6 = vpop.f32.mrf.mxu0 }
  0x87   :  { %v52_v7 = vadd.f32 %v76_v5, %v51_v6 }
  0x89   :  { %v56_v8 = vpack.c.bf16 %v52_v7, %v52_v7 }
  0x8b   :  { %59 = vst.msk [vmem:[%s121_s3] sm:$0xf] %vm58_vm1, %v56_v8 }
  0x8e   :  { %v53_v9 = vpop.f32.mrf.mxu0 }
  0x8f   :  { %v54_v10 = vadd.f32 %v76_v5, %v53_v9 }
  0x91   :  { %v57_v11 = vpack.c.bf16 %v54_v10, %v54_v10 }
  0x93   :  { %60 = vst.msk [vmem:[%s121_s3 + $0x4] sm:$0xf] %vm58_vm1, %v57_v11 }

// kernel: decoder_forward.18
= control target key start
LH: loop header
LB: loop body
LE: loop exit
PB: predicated region body
PF: predicated region fallthrough
CT: control target
= control target key end

     0   :  { %s606_s12 = smov 0   ;;  %s659_s0 = inlined_call_operand.vmem [shape: bf16[2,4,8,8], index: 0, kind: input, shape index: {}]   ;;  %s660_s1 = inlined_call_operand.vmem [shape: bf16[2,4,8,8], index: 1, kind: input, shape index: {}]   ;;  %s661_s2 = inlined_call_operand.vmem [shape: bf16[2,4,8,8], index: 2, kind: input, shape index: {}]   ;;  %s662_s3 = inlined_call_operand.vmem [shape: bf16[2,4,8,8], index: 3, kind: output, shape index: {}]  }
   0x1 LB: > { %s527_s13 = sadd.s32 4294967295, %s584_s12   ;;  %p531_p0 = scmp.ge.s32.totalorder %s584_s12, 1  ;;  %s584_s12 = sphi %s606_s12, %s13_s12  }
   0x2   : > { %p157_p1 = scmp.lt.s32.totalorder %s584_s12, 3 }
   0x4   : > { %p158_p2 = pnand %p531_p0, %p157_p1 }
   0x5   : > { %p191_p3 = scmp.lt.s32.totalorder (!%p158_p2), %s527_s13, 1 }
   0x6   : > { %161 = sbr.rel (%p158_p2) target bundleno = 562 (0x232), region = 32 }
   0xb   : > { %s664_s13 = smov (!%p191_p3, %s527_s13), 1  ;;  %vm224_vm0 = vcmask 64512   ;;  %v305_v12 = vlaneseq  ;;  %vm365_vm2 = vcmask 1043456   ;;  %vm443_vm3 = vcmask 60416  }
   0xc   : > { %s614_s14 = sshll.u32 %s664_s13, 4 }
   0xd   : > { %s200_s17 = scalar_lea.vmem %s660_s1, %s614_s14  ;;  %s195_s20 = scalar_lea.vmem %s659_s0, %s614_s14  ;;  %v306_v13 = vshrl.u32 %v305_v12, 7  ;;  %v308_v14 = vand.u32 127, %v305_v12 }
   0xe   : > { %v216_v0 = vld [vmem:[%s200_s17] sm:$0xf]  ;;  %v218_v1 = vld [vmem:[%s200_s17 + $0x8] sm:$0xf]  ;;  %v219_v2 = vld [vmem:[%s200_s17 + $0xc] sm:$0xf]  ;;  %s205_s23 = scalar_lea.vmem %s661_s2, %s614_s14  ;;  %s210_s26 = scalar_lea.vmem %s662_s3, %s614_s14 }
   0xf   : > { %v229_v3 = vsel %vm224_vm0, %v216_v0, 0  ;;  %v267_v4 = vsel %vm224_vm0, %v218_v1, 0  ;;  %v286_v5 = vsel %vm224_vm0, %v219_v2, 0  ;;  %v217_v6 = vld [vmem:[%s200_s17 + $0x4] sm:$0xf]  ;;  %vm309_vm1 = vcmp.gt.s32.totalorder %v308_v14, %v306_v13 }
  0x10   : > { %238 = vmatpush.bf16.xpose.msra.mxu0 %v229_v3  ;;  %276 = vmatpush.bf16.xpose.msra.mxu2 %v267_v4  ;;  %v248_v7 = vsel %vm224_vm0, %v217_v6, 0  ;;  %v212_v8 = vld [vmem:[%s195_s20] sm:$0xf]  ;;  %v214_v9 = vld [vmem:[%s195_s20 + $0x8] sm:$0xf] }
  0x11   : > { %295 = vmatpush.bf16.xpose.msra.mxu3 %v286_v5  ;;  %257 = vmatpush.bf16.xpose.msra.mxu1 %v248_v7  ;;  %v215_v10 = vld [vmem:[%s195_s20 + $0xc] sm:$0xf]  ;;  %v213_v11 = vld [vmem:[%s195_s20 + $0x4] sm:$0xf]  ;;  %v220_v55 = vld [vmem:[%s205_s23] sm:$0xf] }
  0x12   : > { %v367_v56 = vsel %vm365_vm2, %v220_v55, 0  ;;  %v222_v57 = vld [vmem:[%s205_s23 + $0x8] sm:$0xf]  ;;  %v221_v59 = vld [vmem:[%s205_s23 + $0x4] sm:$0xf] }
  0x13   : > { %v405_v58 = vsel %vm365_vm2, %v222_v57, 0  ;;  %v386_v60 = vsel %vm365_vm2, %v221_v59, 0  ;;  %v223_v61 = vld [vmem:[%s205_s23 + $0xc] sm:$0xf] }
  0x14   : > { %v424_v62 = vsel %vm365_vm2, %v223_v61, 0 }
  0x17   : > { %540 = vmatmul.msk.bf16.vlgmr.msra.gmra.mxu0 %vm224_vm0, %v212_v8  ;;  %542 = vmatmul.msk.bf16.vlgmr.msra.gmra.mxu2 %vm224_vm0, %v214_v9 }
  0x18   : > { %543 = vmatmul.msk.bf16.vlgmr.msra.gmra.mxu3 %vm224_vm0, %v215_v10  ;;  %541 = vmatmul.msk.bf16.vlgmr.msra.gmra.mxu1 %vm224_vm0, %v213_v11 }
  0x19   : > { %376 = vmatpush.bf16.msrb.mxu0 %v367_v56  ;;  %414 = vmatpush.bf16.msrb.mxu2 %v405_v58 }
  0x1a   : > { %395 = vmatpush.bf16.msrb.mxu1 %v386_v60  ;;  %433 = vmatpush.bf16.msrb.mxu3 %v424_v62 }
  0x94   : > { %v240_v15 = vpop.f32.mrf.mxu0 }
  0x95   : > { %v301_v16 = vmul.f32 0.35355338, %v240_v15  ;;  %v259_v17 = vpop.f32.mrf.mxu1 }
  0x96   : > { %v302_v19 = vmul.f32 0.35355338, %v259_v17 }
  0x97   : > { %v310_v18 = vsel %vm309_vm1, -1e+30, %v301_v16 }
  0x98   : > { %v314_v20 = vsel %vm224_vm0, %v310_v18, -inf  ;;  %v311_v24 = vsel %vm309_vm1, -1e+30, %v302_v19 }
  0x99   : > { %315 = vmax.xlane.f32.xlu1 %v314_v20  ;;  %v317_v29 = vsel %vm224_vm0, %v311_v24, -inf }
  0x9a   : > { %v278_v21 = vpop.f32.mrf.mxu2 }
  0x9b   : > { %v303_v22 = vmul.f32 0.35355338, %v278_v21  ;;  %v297_v23 = vpop.f32.mrf.mxu3 }
  0x9c   : > { %v242_v25 = vpop.f32.mrf.mxu0  ;;  %v304_v26 = vmul.f32 0.35355338, %v297_v23 }
  0x9d   : > { %v312_v27 = vsel %vm309_vm1, -1e+30, %v303_v22  ;;  %v261_v30 = vpop.f32.mrf.mxu1 }
  0x9e   : > { %v320_v28 = vsel %vm224_vm0, %v312_v27, -inf  ;;  %v313_v31 = vsel %vm309_vm1, -1e+30, %v304_v26 }
  0x9f   : > { %321 = vmax.xlane.f32.xlu0 %v320_v28  ;;  %v323_v34 = vsel %vm224_vm0, %v313_v31, -inf }
  0xa1   : > { %318 = vmax.xlane.f32.xlu1 %v317_v29 }
  0xa2   : > { %v280_v32 = vpop.f32.mrf.mxu2 }
  0xa3   : > { %v299_v33 = vpop.f32.mrf.mxu3 }
  0xa7   : > { %324 = vmax.xlane.f32.xlu0 %v323_v34 }
 0x10c   : > { %v316_v35 = vpop.xlane.xlu1 %315 }
 0x10d   : > { %v326_v36 = vsub.f32 %v310_v18, %v316_v35 }
 0x10f   : > { %v330_v37 = vmul.f32 1.442695, %v326_v36 }
 0x111   : > { %562 = vpow2.f32 %v330_v37 }
 0x112   : > { %v322_v38 = vpop.xlane.xlu0 %321 }
 0x113   : > { %v328_v39 = vsub.f32 %v312_v27, %v322_v38 }
 0x114   : > { %v319_v40 = vpop.xlane.xlu1 %318 }
 0x115   : > { %v334_v41 = vmul.f32 1.442695, %v328_v39  ;;  %v327_v42 = vsub.f32 %v311_v24, %v319_v40 }
 0x117   : > { %v563_v43 = vpop.eup %562  ;;  %564 = vpow2.f32 %v334_v41  ;;  %v332_v44 = vmul.f32 1.442695, %v327_v42 }
 0x118   : > { %v338_v45 = vsel %vm224_vm0, %v563_v43, 0.0 }
 0x119   : > { %566 = vpow2.f32 %v332_v44  ;;  %339 = vadd.xlane.f32.xlu0 %v338_v45 }
 0x11a   : > { %v325_v46 = vpop.xlane.xlu0 %324 }
 0x11b   : > { %v329_v47 = vsub.f32 %v313_v31, %v325_v46 }
 0x11d   : > { %v565_v48 = vpop.eup %564  ;;  %v336_v49 = vmul.f32 1.442695, %v329_v47 }
 0x11e   : > { %v344_v50 = vsel %vm224_vm0, %v565_v48, 0.0 }
 0x11f   : > { %v567_v51 = vpop.eup %566  ;;  %568 = vpow2.f32 %v336_v49  ;;  %345 = vadd.xlane.f32.xlu2 %v344_v50 }
 0x120   : > { %v341_v52 = vsel %vm224_vm0, %v567_v51, 0.0 }
 0x121   : > { %342 = vadd.xlane.f32.xlu1 %v341_v52 }
 0x125   : > { %v569_v53 = vpop.eup %568 }
 0x126   : > { %v347_v54 = vsel %vm224_vm0, %v569_v53, 0.0 }
 0x127   : > { %348 = vadd.xlane.f32.xlu2 %v347_v54 }
 0x18c   : > { %v340_v63 = vpop.xlane.xlu0 %339 }
 0x18d   : > { %570 = vrcp.f32 %v340_v63 }
 0x192   : > { %v346_v0 = vpop.xlane.xlu2 %345 }
 0x193   : > { %v571_v1 = vpop.eup %570  ;;  %572 = vrcp.f32 %v346_v0 }
 0x194   : > { %v354_v2 = vmul.f32 %v571_v1, %v563_v43  ;;  %v343_v3 = vpop.xlane.xlu1 %342 }
 0x195   : > { %574 = vrcp.f32 %v343_v3 }
 0x196   : > { %v358_v4 = vpack.c.bf16 %v354_v2, %v354_v2 }
 0x198   : > { %544 = vmatmul.msk.bf16.vlgmr.msrb.gmra.mxu0 %vm224_vm0, %v358_v4 }
 0x199   : > { %v573_v5 = vpop.eup %572 }
 0x19a   : > { %v356_v6 = vmul.f32 %v573_v5, %v565_v48  ;;  %v349_v7 = vpop.xlane.xlu2 %348 }
 0x19b   : > { %v575_v8 = vpop.eup %574  ;;  %576 = vrcp.f32 %v349_v7 }
 0x19c   : > { %v355_v9 = vmul.f32 %v575_v8, %v567_v51  ;;  %v360_v10 = vpack.c.bf16 %v356_v6, %v356_v6 }
 0x19e   : > { %v359_v11 = vpack.c.bf16 %v355_v9, %v355_v9  ;;  %546 = vmatmul.msk.bf16.vlgmr.msrb.gmra.mxu2 %vm224_vm0, %v360_v10 }
 0x1a0   : > { %545 = vmatmul.msk.bf16.vlgmr.msrb.gmra.mxu1 %vm224_vm0, %v359_v11 }
 0x1a1   : > { %v577_v12 = vpop.eup %576 }
 0x1a2   : > { %v357_v13 = vmul.f32 %v577_v12, %v569_v53 }
 0x1a4   : > { %v361_v14 = vpack.c.bf16 %v357_v13, %v357_v13 }
 0x1a6   : > { %547 = vmatmul.msk.bf16.vlgmr.msrb.gmra.mxu3 %vm224_vm0, %v361_v14 }
 0x215   : > { %v378_v15 = vpop.f32.mrf.mxu0 }
 0x216   : > { %v439_v16 = vpack.c.bf16 %v378_v15, %v378_v15 }
 0x218   : > { %444 = vst.msk [vmem:[%s210_s26] sm:$0xf] %vm443_vm3, %v439_v16 }
 0x21d   : > { %v380_v17 = vpop.f32.mrf.mxu0  ;;  %v397_v18 = vpop.f32.mrf.mxu1 }
 0x21e   : > { %v440_v19 = vpack.c.bf16 %v397_v18, %v397_v18 }
 0x220   : > { %445 = vst.msk [vmem:[%s210_s26 + $0x4] sm:$0xf] %vm443_vm3, %v440_v19 }
 0x221   : > { %v416_v20 = vpop.f32.mrf.mxu2 }
 0x222   : > { %v441_v21 = vpack.c.bf16 %v416_v20, %v416_v20 }
 0x224   : > { %446 = vst.msk [vmem:[%s210_s26 + $0x8] sm:$0xf] %vm443_vm3, %v441_v21 }
 0x225   : > { %v399_v22 = vpop.f32.mrf.mxu1 }
 0x229   : > { %v418_v23 = vpop.f32.mrf.mxu2  ;;  %v435_v24 = vpop.f32.mrf.mxu3 }
 0x22a   : > { %v442_v25 = vpack.c.bf16 %v435_v24, %v435_v24 }
 0x22c   : > { %447 = vst.msk [vmem:[%s210_s26 + $0xc] sm:$0xf] %vm443_vm3, %v442_v25 }
 0x231   : > { %v437_v26 = vpop.f32.mrf.mxu3 }
 0x232 PF: > { %s13_s12 = sadd.s32 1, %s584_s12  }
 0x233   : > { %p10_p4 = scmp.ge.s32.totalorder %s13_s12, 4  }
 0x235   :  { %12 = sbr.rel (!%p10_p4) target bundleno = 1 (0x1), region = 68 }

// kernel: decoder_forward.16
= control target key start
LH: loop header
LB: loop body
LE: loop exit
PB: predicated region body
PF: predicated region fallthrough
CT: control target
= control target key end

     0   :  { %vm41_vm0 = vcmask 261120   ;;  %s152_s1 = inlined_call_operand.vmem [shape: bf16[32,128], index: 1, kind: input, shape index: {}]   ;;  %s153_s0 = inlined_call_operand.vmem [shape: f32[32,32], index: 0, kind: input, shape index: {}]   ;;  %s154_s2 = inlined_call_operand.vmem [shape: f32[1,128], index: 2, kind: input, shape index: {}]   ;;  %s155_s3 = inlined_call_operand.vmem [shape: bf16[32,128], index: 3, kind: output, shape index: {}]  }
   0x1   :  { %v90_v0 = vld [vmem:[%s152_s1 + $0x8] sm:$0xff]  ;;  %v89_v1 = vld [vmem:[%s152_s1] sm:$0xff]  ;;  %v17_v4 = vld [vmem:[%s153_s0 + $0x10] sm:$0xff] }
   0x2   :  { %v15_v2 = vld [vmem:[%s153_s0] sm:$0xff]  ;;  %v16_v3 = vld [vmem:[%s153_s0 + $0x8] sm:$0xff]  ;;  %54 = vmatpush.bf16.msra.mxu0 %v90_v0  ;;  %102 = vmatpush.bf16.msra.mxu1 %v90_v0  ;;  %v18_v5 = vld [vmem:[%s153_s0 + $0x18] sm:$0xff] }
   0x3   :  { %v19_v6 = vpack.c.bf16 %v16_v3, %v15_v2  ;;  %v20_v7 = vpack.c.bf16 %v18_v5, %v17_v4  ;;  %v104_v10 = vld [vmem:[%s154_s2] ss:$0 sm:$0xff] }
   0x6   :  { %55 = vmatpush.bf16.msra.mxu0 %v89_v1  ;;  %103 = vmatpush.bf16.msra.mxu1 %v89_v1 }
   0x9   :  { %87 = vmatmul.msk.bf16.vlgmr.msra.gmra.mxu0 %vm41_vm0, %v19_v6  ;;  %88 = vmatmul.msk.bf16.vlgmr.msra.gmra.mxu1 %vm41_vm0, %v20_v7 }
  0x86   :  { %v57_v8 = vpop.f32.mrf.mxu0  ;;  %v62_v9 = vpop.f32.mrf.mxu1 }
  0x87   :  { %v58_v13 = vadd.f32 %v104_v10, %v57_v8  ;;  %v63_v14 = vadd.f32 %v104_v10, %v62_v9 }
  0x8e   :  { %v59_v11 = vpop.f32.mrf.mxu0  ;;  %v64_v12 = vpop.f32.mrf.mxu1 }
  0x8f   :  { %v60_v15 = vadd.f32 %v104_v10, %v59_v11  ;;  %v65_v16 = vadd.f32 %v104_v10, %v64_v12 }
  0x91   :  { %v94_v17 = vpack.c.bf16 %v60_v15, %v58_v13  ;;  %v99_v18 = vpack.c.bf16 %v65_v16, %v63_v14 }
  0x93   :  { %95 = vst [vmem:[%s155_s3] sm:$0xff] %v94_v17  }
  0x94   :  { %101 = vst [vmem:[%s155_s3 + $0x8] sm:$0xff] %v99_v18  }

// kernel: decoder_forward.23
= control target key start
LH: loop header
LB: loop body
LE: loop exit
PB: predicated region body
PF: predicated region fallthrough
CT: control target
= control target key end

     0   :  { %vm50_vm0 = vcmask 261120   ;;  %vm107_vm1 = vcmask 523264   ;;  %v239_v26 = vmov 32.0   ;;  %s329_s1 = inlined_call_operand.vmem [shape: bf16[32,64], index: 1, kind: input, shape index: {}]   ;;  %s330_s0 = inlined_call_operand.vmem [shape: f32[16,32], index: 0, kind: input, shape index: {}]   ;;  %s331_s2 = inlined_call_operand.vmem [shape: f32[1,64], index: 2, kind: input, shape index: {}]   ;;  %s332_s4 = inlined_call_operand.vmem [shape: f32[1,32], index: 4, kind: input, shape index: {}]   ;;  %s333_s3 = inlined_call_operand.vmem [shape: bf16[64,32], index: 3, kind: input, shape index: {}]   ;;  %s334_s5 = inlined_call_operand.vmem [shape: f32[1,32], index: 5, kind: input, shape index: {}]   ;;  %s335_s6 = inlined_call_operand.vmem [shape: f32[1,32], index: 6, kind: input, shape index: {}]   ;;  %s336_s7 = inlined_call_operand.vmem [shape: f32[16,32], index: 7, kind: output, shape index: {}]  }
   0x1   :  { %v223_v0 = vld [vmem:[%s329_s1 + $0x8] sm:$0xff]  ;;  %v222_v1 = vld [vmem:[%s329_s1] sm:$0xff]  ;;  %v227_v5 = vld [vmem:[%s333_s3 + $0x18] sm:$0xff]  ;;  %233 = vrcp.f32 %v239_v26 }
   0x2   :  { %60 = vmatpush.bf16.msra.mxu0 %v223_v0  ;;  %v27_v2 = vld [vmem:[%s330_s0] sm:$0xff]  ;;  %v28_v3 = vld [vmem:[%s330_s0 + $0x8] sm:$0xff]  ;;  %115 = vmatpush.bf16.msra.mxu1 %v227_v5  ;;  %v226_v6 = vld [vmem:[%s333_s3 + $0x10] sm:$0xff] }
   0x3   :  { %v29_v4 = vpack.c.bf16 %v28_v3, %v27_v2  ;;  %v225_v7 = vld [vmem:[%s333_s3 + $0x8] sm:$0xff]  ;;  %v224_v8 = vld [vmem:[%s333_s3] sm:$0xff] }
   0x4   :  { %v229_v10 = vld [vmem:[%s331_s2] ss:$0 sm:$0xff] }
   0x5   :  { %v230_v17 = vld [vmem:[%s332_s4] ss:$0 sm:$0xff] }
   0x6   :  { %61 = vmatpush.bf16.msra.mxu0 %v222_v1  ;;  %116 = vmatpush.bf16.msra.mxu1 %v226_v6  ;;  %v231_v57 = vld [vmem:[%s334_s5] ss:$0 sm:$0xff] }
   0x7   :  { %v234_v27 = vpop.eup %233  ;;  %v232_v60 = vld [vmem:[%s335_s6] ss:$0 sm:$0xff] }
   0x8   :  { %v134_v28 = vmul.f32 32.0, %v234_v27  ;;  %vm138_vm2 = vweird.f32 %v234_v27 }
   0x9   :  { %204 = vmatmul.msk.bf16.vlgmr.msra.gmra.mxu0 %vm50_vm0, %v29_v4 }
   0xa   :  { %117 = vmatpush.bf16.msra.mxu1 %v225_v7  ;;  %v135_v29 = vsub.f32 1.0, %v134_v28 }
   0xc   :  { %v136_v30 = vmul.f32 %v234_v27, %v135_v29 }
   0xe   :  { %118 = vmatpush.bf16.msra.mxu1 %v224_v8  ;;  %v137_v31 = vadd.f32 %v234_v27, %v136_v30 }
  0x10   :  { %v139_v32 = vsel %vm138_vm2, %v234_v27, %v137_v31 }
  0x86   :  { %v63_v9 = vpop.f32.mrf.mxu0 }
  0x87   :  { %v64_v11 = vadd.f32 %v229_v10, %v63_v9 }
  0x89   :  { %v68_v14 = vmax.f32 %v64_v11, 0.0 }
  0x8e   :  { %v65_v12 = vpop.f32.mrf.mxu0 }
  0x8f   :  { %v66_v13 = vadd.f32 %v229_v10, %v65_v12 }
  0x91   :  { %v69_v15 = vmax.f32 %v66_v13, 0.0 }
  0x93   :  { %v70_v16 = vpack.c.bf16 %v69_v15, %v68_v14 }
  0x95   :  { %221 = vmatmul.msk.bf16.vlgmr.msra.gmra.mxu1 %vm107_vm1, %v70_v16 }
 0x112   :  { %v120_v18 = vpop.f32.mrf.mxu1 }
 0x113   :  { %v121_v19 = vadd.f32 %v230_v17, %v120_v18 }
 0x115   :  { %v125_v20 = vadd.f32 %v121_v19, %v27_v2 }
 0x117   :  { %v127_v21 = vsel %vm50_vm0, %v125_v20, 0.0 }
 0x118   :  { %128 = vadd.xlane.f32.xlu0 %v127_v21 }
 0x11a   :  { %v122_v22 = vpop.f32.mrf.mxu1 }
 0x11b   :  { %v123_v23 = vadd.f32 %v230_v17, %v122_v22 }
 0x11d   :  { %v126_v24 = vadd.f32 %v123_v23, %v28_v3 }
 0x11f   :  { %v130_v25 = vsel %vm50_vm0, %v126_v24, 0.0 }
 0x120   :  { %131 = vadd.xlane.f32.xlu0 %v130_v25 }
 0x18b   :  { %v129_v33 = vpop.xlane.xlu0 %128 }
 0x18c   :  { %v140_v34 = vmul.f32 %v139_v32, %v129_v33 }
 0x18e   :  { %v142_v35 = vsub.f32 %v125_v20, %v140_v34 }
 0x190   :  { %v144_v36 = vmul.f32 %v142_v35, %v142_v35 }
 0x192   :  { %v146_v37 = vsel %vm50_vm0, %v144_v36, 0.0 }
 0x193   :  { %147 = vadd.xlane.f32.xlu1 %v146_v37  ;;  %v132_v38 = vpop.xlane.xlu0 %131 }
 0x194   :  { %v141_v39 = vmul.f32 %v139_v32, %v132_v38 }
 0x196   :  { %v143_v40 = vsub.f32 %v126_v24, %v141_v39 }
 0x198   :  { %v145_v41 = vmul.f32 %v143_v40, %v143_v40 }
 0x19a   :  { %v149_v42 = vsel %vm50_vm0, %v145_v41, 0.0 }
 0x19b   :  { %150 = vadd.xlane.f32.xlu1 %v149_v42 }
 0x206   :  { %v148_v43 = vpop.xlane.xlu1 %147 }
 0x207   :  { %v152_v44 = vmul.f32 %v148_v43, %v139_v32 }
 0x209   :  { %v154_v45 = vadd.f32 1e-05, %v152_v44 }
 0x20b   :  { %235 = vrsqrt.f32 %v154_v45  ;;  %vm162_vm4 = vweird.f32 %v154_v45 }
 0x20e   :  { %v151_v46 = vpop.xlane.xlu1 %150 }
 0x20f   :  { %v153_v47 = vmul.f32 %v151_v46, %v139_v32 }
 0x211   :  { %v236_v48 = vpop.eup %235  ;;  %v155_v49 = vadd.f32 1e-05, %v153_v47 }
 0x212   :  { %v157_v50 = vmul.f32 %v236_v48, %v154_v45  ;;  %vm163_vm3 = vweird.f32 %v236_v48 }
 0x213   :  { %237 = vrsqrt.f32 %v155_v49  ;;  %vm164_vm5 = vmor %vm162_vm4, %vm163_vm3  ;;  %vm172_vm7 = vweird.f32 %v155_v49 }
 0x214   :  { %v158_v51 = vmul.f32 %v236_v48, %v157_v50 }
 0x216   :  { %v159_v52 = vmul.f32 0.5, %v158_v51 }
 0x218   :  { %v160_v53 = vsub.f32 1.5, %v159_v52 }
 0x219   :  { %v238_v54 = vpop.eup %237 }
 0x21a   :  { %v161_v55 = vmul.f32 %v236_v48, %v160_v53  ;;  %v167_v56 = vmul.f32 %v238_v54, %v155_v49  ;;  %vm173_vm6 = vweird.f32 %v238_v54 }
 0x21b   :  { %vm174_vm8 = vmor %vm172_vm7, %vm173_vm6 }
 0x21c   :  { %v165_v58 = vsel %vm164_vm5, %v236_v48, %v161_v55  ;;  %v168_v59 = vmul.f32 %v238_v54, %v167_v56 }
 0x21d   :  { %v176_v61 = vmul.f32 %v165_v58, %v142_v35 }
 0x21e   :  { %v169_v62 = vmul.f32 0.5, %v168_v59 }
 0x21f   :  { %v182_v63 = vmul.f32 %v231_v57, %v176_v61 }
 0x220   :  { %v170_v0 = vsub.f32 1.5, %v169_v62 }
 0x221   :  { %v188_v1 = vadd.f32 %v232_v60, %v182_v63 }
 0x222   :  { %v171_v2 = vmul.f32 %v238_v54, %v170_v0 }
 0x223   :  { %190 = vst.msk [vmem:[%s336_s7] sm:$0xff] %vm50_vm0, %v188_v1 }
 0x224   :  { %v175_v3 = vsel %vm174_vm8, %v238_v54, %v171_v2 }
 0x225   :  { %v177_v4 = vmul.f32 %v175_v3, %v143_v40 }
 0x227   :  { %v183_v5 = vmul.f32 %v231_v57, %v177_v4 }
 0x229   :  { %v189_v6 = vadd.f32 %v232_v60, %v183_v5 }
 0x22b   :  { %191 = vst.msk [vmem:[%s336_s7 + $0x8] sm:$0xff] %vm50_vm0, %v189_v6 }

// kernel: decoder_forward.21
= control target key start
LH: loop header
LB: loop body
LE: loop exit
PB: predicated region body
PF: predicated region fallthrough
CT: control target
= control target key end

     0   :  { %s677_s12 = smov 0   ;;  %s732_s0 = inlined_call_operand.vmem [shape: bf16[2,4,8,8], index: 0, kind: input, shape index: {}]   ;;  %s733_s1 = inlined_call_operand.vmem [shape: bf16[2,4,16,8], index: 1, kind: input, shape index: {}]   ;;  %s734_s2 = inlined_call_operand.vmem [shape: bf16[2,4,16,8], index: 2, kind: input, shape index: {}]   ;;  %s735_s3 = inlined_call_operand.vmem [shape: bf16[2,4,8,8], index: 3, kind: output, shape index: {}]  }
   0x1 LB: > { %s558_s13 = sadd.s32 4294967295, %s655_s12   ;;  %p562_p0 = scmp.ge.s32.totalorder %s655_s12, 1  ;;  %s655_s12 = sphi %s677_s12, %s13_s12  }
   0x2   : > { %p157_p1 = scmp.lt.s32.totalorder %s655_s12, 3 }
   0x4   : > { %p158_p2 = pnand %p562_p0, %p157_p1 }
   0x5   : > { %p191_p3 = scmp.lt.s32.totalorder (!%p158_p2), %s558_s13, 1 }
   0x6   : > { %161 = sbr.rel (%p158_p2) target bundleno = 561 (0x231), region = 32 }
   0xb   : > { %s737_s13 = smov (!%p191_p3, %s558_s13), 1  ;;  %vm237_vm0 = vcmask 64512   ;;  %vm333_vm1 = vcmask 130048   ;;  %vm474_vm2 = vcmask 60416  }
   0xc   : > { %s614_s14 = sshll.u32 %s737_s13, 5  ;;  %s613_s18 = sshll.u32 %s737_s13, 4 }
   0xd   : > { %s200_s17 = scalar_lea.vmem %s733_s1, %s614_s14  ;;  %s195_s21 = scalar_lea.vmem %s732_s0, %s613_s18 }
   0xe   : > { %v617_v0 = vld [vmem:[%s200_s17] sm:$0xff]  ;;  %v619_v1 = vld [vmem:[%s200_s17 + $0x10] sm:$0xff]  ;;  %v620_v2 = vld [vmem:[%s200_s17 + $0x18] sm:$0xff]  ;;  %s205_s24 = scalar_lea.vmem %s734_s2, %s614_s14  ;;  %s210_s27 = scalar_lea.vmem %s735_s3, %s613_s18 }
   0xf   : > { %v242_v3 = vsel %vm237_vm0, %v617_v0, 0  ;;  %v290_v4 = vsel %vm237_vm0, %v619_v1, 0  ;;  %v314_v5 = vsel %vm237_vm0, %v620_v2, 0  ;;  %v618_v6 = vld [vmem:[%s200_s17 + $0x8] sm:$0xff]  ;;  %v212_v8 = vld [vmem:[%s195_s21] sm:$0xf] }
  0x10   : > { %251 = vmatpush.bf16.xpose.msra.mxu0 %v242_v3  ;;  %299 = vmatpush.bf16.xpose.msra.mxu2 %v290_v4  ;;  %v266_v7 = vsel %vm237_vm0, %v618_v6, 0  ;;  %v214_v9 = vld [vmem:[%s195_s21 + $0x8] sm:$0xf]  ;;  %v215_v10 = vld [vmem:[%s195_s21 + $0xc] sm:$0xf]  ;;  %v621_v48 = vld [vmem:[%s205_s24] sm:$0xff] }
  0x11   : > { %323 = vmatpush.bf16.xpose.msra.mxu3 %v314_v5  ;;  %275 = vmatpush.bf16.xpose.msra.mxu1 %v266_v7  ;;  %v213_v11 = vld [vmem:[%s195_s21 + $0x4] sm:$0xf]  ;;  %v623_v49 = vld [vmem:[%s205_s24 + $0x10] sm:$0xff]  ;;  %v622_v50 = vld [vmem:[%s205_s24 + $0x8] sm:$0xff] }
  0x12   : > { %v624_v51 = vld [vmem:[%s205_s24 + $0x18] sm:$0xff] }
  0x17   : > { %575 = vmatmul.msk.bf16.vlgmr.msra.gmra.mxu0 %vm237_vm0, %v212_v8  ;;  %585 = vmatmul.msk.bf16.vlgmr.msra.gmra.mxu2 %vm237_vm0, %v214_v9 }
  0x18   : > { %590 = vmatmul.msk.bf16.vlgmr.msra.gmra.mxu3 %vm237_vm0, %v215_v10  ;;  %580 = vmatmul.msk.bf16.vlgmr.msra.gmra.mxu1 %vm237_vm0, %v213_v11 }
  0x19   : > { %398 = vmatpush.bf16.msrb.mxu0 %v621_v48  ;;  %442 = vmatpush.bf16.msrb.mxu2 %v623_v49 }
  0x1a   : > { %420 = vmatpush.bf16.msrb.mxu1 %v622_v50  ;;  %464 = vmatpush.bf16.msrb.mxu3 %v624_v51 }
  0x94   : > { %v253_v12 = vpop.f32.mrf.mxu0 }
  0x95   : > { %v329_v13 = vmul.f32 0.35355338, %v253_v12  ;;  %v277_v14 = vpop.f32.mrf.mxu1 }
  0x96   : > { %v330_v16 = vmul.f32 0.35355338, %v277_v14 }
  0x97   : > { %v334_v15 = vsel %vm333_vm1, %v329_v13, -inf }
  0x98   : > { %335 = vmax.xlane.f32.xlu1 %v334_v15  ;;  %v337_v22 = vsel %vm333_vm1, %v330_v16, -inf }
  0x9a   : > { %v301_v17 = vpop.f32.mrf.mxu2 }
  0x9b   : > { %v331_v18 = vmul.f32 0.35355338, %v301_v17  ;;  %v325_v19 = vpop.f32.mrf.mxu3 }
  0x9c   : > { %v255_v20 = vpop.f32.mrf.mxu0  ;;  %v332_v24 = vmul.f32 0.35355338, %v325_v19 }
  0x9d   : > { %v340_v21 = vsel %vm333_vm1, %v331_v18, -inf  ;;  %v279_v23 = vpop.f32.mrf.mxu1 }
  0x9e   : > { %341 = vmax.xlane.f32.xlu0 %v340_v21  ;;  %v343_v27 = vsel %vm333_vm1, %v332_v24, -inf }
  0xa0   : > { %338 = vmax.xlane.f32.xlu1 %v337_v22 }
  0xa2   : > { %v303_v25 = vpop.f32.mrf.mxu2 }
  0xa3   : > { %v327_v26 = vpop.f32.mrf.mxu3 }
  0xa6   : > { %344 = vmax.xlane.f32.xlu0 %v343_v27 }
 0x10b   : > { %v336_v28 = vpop.xlane.xlu1 %335 }
 0x10c   : > { %v346_v29 = vsub.f32 %v329_v13, %v336_v28 }
 0x10e   : > { %v350_v30 = vmul.f32 1.442695, %v346_v29 }
 0x110   : > { %633 = vpow2.f32 %v350_v30 }
 0x111   : > { %v342_v31 = vpop.xlane.xlu0 %341 }
 0x112   : > { %v348_v32 = vsub.f32 %v331_v18, %v342_v31 }
 0x113   : > { %v339_v33 = vpop.xlane.xlu1 %338 }
 0x114   : > { %v354_v34 = vmul.f32 1.442695, %v348_v32  ;;  %v347_v35 = vsub.f32 %v330_v16, %v339_v33 }
 0x116   : > { %v634_v36 = vpop.eup %633  ;;  %635 = vpow2.f32 %v354_v34  ;;  %v352_v37 = vmul.f32 1.442695, %v347_v35 }
 0x117   : > { %v358_v38 = vsel %vm333_vm1, %v634_v36, 0.0 }
 0x118   : > { %637 = vpow2.f32 %v352_v37  ;;  %359 = vadd.xlane.f32.xlu0 %v358_v38 }
 0x119   : > { %v345_v39 = vpop.xlane.xlu0 %344 }
 0x11a   : > { %v349_v40 = vsub.f32 %v332_v24, %v345_v39 }
 0x11c   : > { %v636_v41 = vpop.eup %635  ;;  %v356_v42 = vmul.f32 1.442695, %v349_v40 }
 0x11d   : > { %v364_v43 = vsel %vm333_vm1, %v636_v41, 0.0 }
 0x11e   : > { %v638_v44 = vpop.eup %637  ;;  %639 = vpow2.f32 %v356_v42  ;;  %365 = vadd.xlane.f32.xlu2 %v364_v43 }
 0x11f   : > { %v361_v45 = vsel %vm333_vm1, %v638_v44, 0.0 }
 0x120   : > { %362 = vadd.xlane.f32.xlu1 %v361_v45 }
 0x124   : > { %v640_v46 = vpop.eup %639 }
 0x125   : > { %v367_v47 = vsel %vm333_vm1, %v640_v46, 0.0 }
 0x126   : > { %368 = vadd.xlane.f32.xlu2 %v367_v47 }
 0x18b   : > { %v360_v52 = vpop.xlane.xlu0 %359 }
 0x18c   : > { %641 = vrcp.f32 %v360_v52 }
 0x191   : > { %v366_v53 = vpop.xlane.xlu2 %365 }
 0x192   : > { %v642_v54 = vpop.eup %641  ;;  %643 = vrcp.f32 %v366_v53 }
 0x193   : > { %v374_v55 = vmul.f32 %v642_v54, %v634_v36  ;;  %v363_v56 = vpop.xlane.xlu1 %362 }
 0x194   : > { %645 = vrcp.f32 %v363_v56 }
 0x195   : > { %v378_v57 = vpack.c.bf16 %v374_v55, %v374_v55 }
 0x197   : > { %595 = vmatmul.msk.bf16.vlgmr.msrb.gmra.mxu0 %vm333_vm1, %v378_v57 }
 0x198   : > { %v644_v58 = vpop.eup %643 }
 0x199   : > { %v376_v59 = vmul.f32 %v644_v58, %v636_v41  ;;  %v369_v60 = vpop.xlane.xlu2 %368 }
 0x19a   : > { %v646_v61 = vpop.eup %645  ;;  %647 = vrcp.f32 %v369_v60 }
 0x19b   : > { %v375_v62 = vmul.f32 %v646_v61, %v638_v44  ;;  %v380_v63 = vpack.c.bf16 %v376_v59, %v376_v59 }
 0x19d   : > { %v379_v0 = vpack.c.bf16 %v375_v62, %v375_v62  ;;  %605 = vmatmul.msk.bf16.vlgmr.msrb.gmra.mxu2 %vm333_vm1, %v380_v63 }
 0x19f   : > { %600 = vmatmul.msk.bf16.vlgmr.msrb.gmra.mxu1 %vm333_vm1, %v379_v0 }
 0x1a0   : > { %v648_v1 = vpop.eup %647 }
 0x1a1   : > { %v377_v2 = vmul.f32 %v648_v1, %v640_v46 }
 0x1a3   : > { %v381_v3 = vpack.c.bf16 %v377_v2, %v377_v2 }
 0x1a5   : > { %610 = vmatmul.msk.bf16.vlgmr.msrb.gmra.mxu3 %vm333_vm1, %v381_v3 }
 0x214   : > { %v400_v4 = vpop.f32.mrf.mxu0 }
 0x215   : > { %v470_v5 = vpack.c.bf16 %v400_v4, %v400_v4 }
 0x217   : > { %475 = vst.msk [vmem:[%s210_s27] sm:$0xf] %vm474_vm2, %v470_v5 }
 0x21c   : > { %v402_v6 = vpop.f32.mrf.mxu0  ;;  %v422_v7 = vpop.f32.mrf.mxu1 }
 0x21d   : > { %v471_v8 = vpack.c.bf16 %v422_v7, %v422_v7 }
 0x21f   : > { %476 = vst.msk [vmem:[%s210_s27 + $0x4] sm:$0xf] %vm474_vm2, %v471_v8 }
 0x220   : > { %v444_v9 = vpop.f32.mrf.mxu2 }
 0x221   : > { %v472_v10 = vpack.c.bf16 %v444_v9, %v444_v9 }
 0x223   : > { %477 = vst.msk [vmem:[%s210_s27 + $0x8] sm:$0xf] %vm474_vm2, %v472_v10 }
 0x224   : > { %v424_v11 = vpop.f32.mrf.mxu1 }
 0x228   : > { %v446_v12 = vpop.f32.mrf.mxu2  ;;  %v466_v13 = vpop.f32.mrf.mxu3 }
 0x229   : > { %v473_v14 = vpack.c.bf16 %v466_v13, %v466_v13 }
 0x22b   : > { %478 = vst.msk [vmem:[%s210_s27 + $0xc] sm:$0xf] %vm474_vm2, %v473_v14 }
 0x230   : > { %v468_v15 = vpop.f32.mrf.mxu3 }
 0x231 PF: > { %s13_s12 = sadd.s32 1, %s655_s12  }
 0x232   : > { %p10_p4 = scmp.ge.s32.totalorder %s13_s12, 4  }
 0x234   :  { %12 = sbr.rel (!%p10_p4) target bundleno = 1 (0x1), region = 68 }

// kernel: decoder_forward.31
= control target key start
LH: loop header
LB: loop body
LE: loop exit
PB: predicated region body
PF: predicated region fallthrough
CT: control target
= control target key end

     0   :  { %vm23_vm0 = vcmask 261120   ;;  %v152_v4 = vmov 32.0   ;;  %s215_s0 = inlined_call_operand.vmem [shape: f32[16,32], index: 0, kind: input, shape index: {}]   ;;  %s216_s1 = inlined_call_operand.vmem [shape: f32[1,32], index: 1, kind: input, shape index: {}]   ;;  %s217_s2 = inlined_call_operand.vmem [shape: f32[1,32], index: 2, kind: input, shape index: {}]   ;;  %s218_s4 = inlined_call_operand.vmem [shape: f32[1,128], index: 4, kind: input, shape index: {}]   ;;  %s219_s3 = inlined_call_operand.vmem [shape: bf16[32,128], index: 3, kind: input, shape index: {}]   ;;  %s220_s5 = inlined_call_operand.vmem [shape: f32[16,128], index: 5, kind: output, shape index: {}]  }
   0x1   :  { %v21_v0 = vld [vmem:[%s215_s0] sm:$0xff]  ;;  %v22_v2 = vld [vmem:[%s215_s0 + $0x8] sm:$0xff]  ;;  %146 = vrcp.f32 %v152_v4 }
   0x2   :  { %v24_v1 = vsel %vm23_vm0, %v21_v0, 0.0  ;;  %v27_v3 = vsel %vm23_vm0, %v22_v2, 0.0  ;;  %v141_v21 = vld [vmem:[%s219_s3 + $0x8] sm:$0xff]  ;;  %v140_v23 = vld [vmem:[%s219_s3] sm:$0xff] }
   0x3   :  { %25 = vadd.xlane.f32.xlu0 %v24_v1  ;;  %117 = vmatpush.bf16.msra.mxu0 %v141_v21  ;;  %v143_v42 = vld [vmem:[%s216_s1] ss:$0 sm:$0xff] }
   0x4   :  { %v144_v47 = vld [vmem:[%s217_s2] ss:$0 sm:$0xff] }
   0x5   :  { %v145_v52 = vld [vmem:[%s218_s4] ss:$0 sm:$0xff] }
   0x7   :  { %v147_v5 = vpop.eup %146  ;;  %118 = vmatpush.bf16.msra.mxu0 %v140_v23 }
   0x8   :  { %v31_v6 = vmul.f32 32.0, %v147_v5  ;;  %vm35_vm1 = vweird.f32 %v147_v5 }
   0xa   :  { %v32_v7 = vsub.f32 1.0, %v31_v6 }
   0xb   :  { %28 = vadd.xlane.f32.xlu0 %v27_v3 }
   0xc   :  { %v33_v8 = vmul.f32 %v147_v5, %v32_v7 }
   0xe   :  { %v34_v9 = vadd.f32 %v147_v5, %v33_v8 }
  0x10   :  { %v36_v10 = vsel %vm35_vm1, %v147_v5, %v34_v9 }
  0x76   :  { %v26_v11 = vpop.xlane.xlu0 %25 }
  0x77   :  { %v37_v12 = vmul.f32 %v36_v10, %v26_v11 }
  0x79   :  { %v39_v13 = vsub.f32 %v21_v0, %v37_v12 }
  0x7b   :  { %v41_v14 = vmul.f32 %v39_v13, %v39_v13 }
  0x7d   :  { %v43_v15 = vsel %vm23_vm0, %v41_v14, 0.0 }
  0x7e   :  { %44 = vadd.xlane.f32.xlu1 %v43_v15  ;;  %v29_v16 = vpop.xlane.xlu0 %28 }
  0x7f   :  { %v38_v17 = vmul.f32 %v36_v10, %v29_v16 }
  0x81   :  { %v40_v18 = vsub.f32 %v22_v2, %v38_v17 }
  0x83   :  { %v42_v19 = vmul.f32 %v40_v18, %v40_v18 }
  0x85   :  { %v46_v20 = vsel %vm23_vm0, %v42_v19, 0.0 }
  0x86   :  { %47 = vadd.xlane.f32.xlu1 %v46_v20 }
  0xf1   :  { %v45_v22 = vpop.xlane.xlu1 %44 }
  0xf2   :  { %v49_v24 = vmul.f32 %v45_v22, %v36_v10 }
  0xf4   :  { %v51_v25 = vadd.f32 1e-05, %v49_v24 }
  0xf6   :  { %148 = vrsqrt.f32 %v51_v25  ;;  %vm59_vm3 = vweird.f32 %v51_v25 }
  0xf9   :  { %v48_v26 = vpop.xlane.xlu1 %47 }
  0xfa   :  { %v50_v27 = vmul.f32 %v48_v26, %v36_v10 }
  0xfc   :  { %v149_v28 = vpop.eup %148  ;;  %v52_v29 = vadd.f32 1e-05, %v50_v27 }
  0xfd   :  { %v54_v30 = vmul.f32 %v149_v28, %v51_v25  ;;  %vm60_vm2 = vweird.f32 %v149_v28 }
  0xfe   :  { %150 = vrsqrt.f32 %v52_v29  ;;  %vm61_vm4 = vmor %vm59_vm3, %vm60_vm2  ;;  %vm69_vm6 = vweird.f32 %v52_v29 }
  0xff   :  { %v55_v31 = vmul.f32 %v149_v28, %v54_v30 }
 0x101   :  { %v56_v32 = vmul.f32 0.5, %v55_v31 }
 0x103   :  { %v57_v33 = vsub.f32 1.5, %v56_v32 }
 0x104   :  { %v151_v34 = vpop.eup %150 }
 0x105   :  { %v58_v35 = vmul.f32 %v149_v28, %v57_v33  ;;  %v64_v36 = vmul.f32 %v151_v34, %v52_v29  ;;  %vm70_vm5 = vweird.f32 %v151_v34 }
 0x106   :  { %vm71_vm7 = vmor %vm69_vm6, %vm70_vm5 }
 0x107   :  { %v65_v37 = vmul.f32 %v151_v34, %v64_v36  ;;  %v62_v38 = vsel %vm61_vm4, %v149_v28, %v58_v35 }
 0x108   :  { %v73_v41 = vmul.f32 %v62_v38, %v39_v13 }
 0x109   :  { %v66_v39 = vmul.f32 0.5, %v65_v37 }
 0x10a   :  { %v79_v46 = vmul.f32 %v143_v42, %v73_v41 }
 0x10b   :  { %v67_v40 = vsub.f32 1.5, %v66_v39 }
 0x10c   :  { %v85_v49 = vadd.f32 %v144_v47, %v79_v46 }
 0x10d   :  { %v68_v43 = vmul.f32 %v151_v34, %v67_v40 }
 0x10f   :  { %v72_v44 = vsel %vm71_vm7, %v151_v34, %v68_v43 }
 0x110   :  { %v74_v45 = vmul.f32 %v72_v44, %v40_v18 }
 0x112   :  { %v80_v48 = vmul.f32 %v143_v42, %v74_v45 }
 0x114   :  { %v86_v50 = vadd.f32 %v144_v47, %v80_v48 }
 0x116   :  { %v87_v51 = vpack.c.bf16 %v86_v50, %v85_v49 }
 0x118   :  { %139 = vmatmul.msk.bf16.vlgmr.msra.gmra.mxu0 %vm23_vm0, %v87_v51 }
 0x195   :  { %v120_v53 = vpop.f32.mrf.mxu0 }
 0x196   :  { %v121_v54 = vadd.f32 %v145_v52, %v120_v53 }
 0x198   :  { %125 = vst [vmem:[%s220_s5] sm:$0xff] %v121_v54 }
 0x19d   :  { %v122_v55 = vpop.f32.mrf.mxu0 }
 0x19e   :  { %v123_v56 = vadd.f32 %v145_v52, %v122_v55 }
 0x1a0   :  { %126 = vst [vmem:[%s220_s5 + $0x8] sm:$0xff] %v123_v56 }

</bundles_post_ra>
